<compile_context>
chip_gen: v7x
topology: tpu7x:2x2x1
jax: 0.10.0
libtpu: 0.0.40
codegen_flags: <defaults>
</compile_context>

<pallas_src>
import functools

import jax
import jax.numpy as jnp
from jax.experimental import pallas as pl
from jax.experimental.pallas import tpu as pltpu


def _round_up(x, m):
    return ((x + m - 1) // m) * m


def _full_spec(shape):
    return pl.BlockSpec(shape, lambda: (0,) * len(shape))


def _choose_vocab_tile(V, max_tn=2048):
    """Pick the vocab tile width TN for the weight-streaming projection.

    Preferences: multiple of 256 (v6e/v7x MXU alignment), as large as possible
    (>=512 keeps the memory-bound weight stream near HBM roofline), >=2 tiles
    and ideally an even tile count (v7x megacore split), padding waste <= ~8%.
    """
    candidates = [t for t in (2048, 1024, 512, 256) if t <= max_tn]
    for require_even in (True, False):
        for tn in candidates:
            vp = _round_up(V, tn)
            tiles = vp // tn
            waste = (vp - V) / vp
            if tiles >= 2 and waste <= 0.08 and (tiles % 2 == 0 or not require_even):
                return tn
    return 128  # tiny-vocab fallback (single lane-width tile)


def _vocab_vmem_limit(B, H2, TN):
    # Double-buffered tiles: bf16 weight + f32 bias + f32 output + bf16 lhs.
    need = 2 * (H2 * TN * 2 + TN * 4 + B * TN * 4 + B * H2 * 2)
    return int(min(48 << 20, max(2 * need, 8 << 20)))


# ---------------------------------------------------------------------------
# Kernel 1: attention -> context -> fused one-step bidirectional LSTM cell.
# ---------------------------------------------------------------------------
def attn_lstm_kernel(
    enc_ref,      # (B, Tx, 2H)  bf16
    h0_ref,       # (B, H)       bf16
    emb_ref,      # (B, E)       bf16
    wa_ref,       # (H, H)       bf16   Wa.weight.T
    ua_ref,       # (2H, H)      bf16   Ua.weight.T
    attn_b_ref,   # (1, H)       f32    Wa.bias + Ua.bias (folded)
    va_ref,       # (1, H)       f32    Va.weight
    wemb_ref,     # (E, 6H)      bf16   fused gate weights (embedding slice)
    wctx_ref,     # (2H, 6H)     bf16   fused gate weights (context slice)
    whh_ref,      # (H, 6H)      bf16   fused recurrent gate weights
    bg_ref,       # (1, 6H)      f32    fused gate bias (b_ih + b_hh)
    h_ref,        # out (B, 2H)  f32    [h_fwd | h_bwd]
    c_ref,        # out (B, 2H)  f32    [c_fwd | c_bwd]
    hbf_ref,      # out (B, 2H)  bf16   bf16 copy of h for the vocab matmul
):
    B, Tx, H2 = enc_ref.shape
    H = wa_ref.shape[0]

    enc = enc_ref[...]                                        # (B, Tx, 2H) bf16
    h0 = h0_ref[...]                                          # (B, H) bf16

    # ---- additive (Bahdanau) attention ------------------------------------
    wa_h = (jnp.dot(h0, wa_ref[...], preferred_element_type=jnp.float32)
            + attn_b_ref[...])                                # (B, H) f32
    ua_e = jnp.dot(enc.reshape(B * Tx, H2), ua_ref[...],
                   preferred_element_type=jnp.float32).reshape(B, Tx, H)
    t = jnp.tanh(ua_e + wa_h[:, None, :])                     # (B, Tx, H)

    # Va bias shifts all energies equally -> softmax-invariant, dropped.
    e = jnp.sum(t * va_ref[...].reshape(1, 1, H), axis=-1)    # (B, Tx)
    e = e - jnp.max(e, axis=1, keepdims=True)
    p = jnp.exp(e)
    alphas = p / jnp.sum(p, axis=1, keepdims=True)            # exact softmax

    # context_b = alphas_b @ enc_b : batched matmul on the MXU (q = 1).
    context = jnp.einsum(
        "bqt,btd->bqd", alphas[:, None, :], enc.astype(jnp.float32),
        preferred_element_type=jnp.float32)[:, 0, :]          # (B, 2H) f32

    # ---- one-step bi-LSTM cell, fused across directions --------------------
    # gate layout: [i_f | i_b | g_f | g_b | o_f | o_b]; forget gate dropped
    # because c_0 == 0 (PyTorch default for hx=None cell state).
    gates = (
        jnp.dot(emb_ref[...], wemb_ref[...], preferred_element_type=jnp.float32)
        + jnp.dot(context.astype(jnp.bfloat16), wctx_ref[...],
                  preferred_element_type=jnp.float32)
        + jnp.dot(h0, whh_ref[...], preferred_element_type=jnp.float32)
        + bg_ref[...]
    )                                                         # (B, 6H) f32
    i = jax.nn.sigmoid(gates[:, 0:H2])
    g = jnp.tanh(gates[:, H2:2 * H2])
    o = jax.nn.sigmoid(gates[:, 2 * H2:3 * H2])
    c = i * g                                                 # f * c_0 == 0
    h = o * jnp.tanh(c)

    h_ref[...] = h
    c_ref[...] = c
    hbf_ref[...] = h.astype(jnp.bfloat16)


# ---------------------------------------------------------------------------
# Kernel 2: vocab projection, tiled over V (pipelined weight streaming).
# ---------------------------------------------------------------------------
def vocab_proj_kernel(h_ref, w_ref, b_ref, o_ref):
    o_ref[...] = (jnp.dot(h_ref[...], w_ref[...],
                          preferred_element_type=jnp.float32)
                  + b_ref[...])


# ---------------------------------------------------------------------------
# Host-side parameter repacking (gate fusion, concat elimination, bf16, pad V).
# ---------------------------------------------------------------------------
def pack_params(params, max_tn=2048):
    H = params["wa_wT"].shape[0]
    E = params["emb_table"].shape[1]
    V = params["out_b"].shape[1]
    bf16 = lambda a: a.astype(jnp.bfloat16)

    def fuse_gates(wf, wb):
        # PyTorch LSTM gate order is [i, f, g, o]; drop f, interleave directions.
        cols = []
        for gi in (0, 2, 3):
            cols.append(wf[:, gi * H:(gi + 1) * H])
            cols.append(wb[:, gi * H:(gi + 1) * H])
        return jnp.concatenate(cols, axis=1)

    wih = fuse_gates(params["wih_f"], params["wih_b"])        # (E+2H, 6H)
    whh = fuse_gates(params["whh_f"], params["whh_b"])        # (H, 6H)
    b_gates = (fuse_gates(params["bih_f"], params["bih_b"])
               + fuse_gates(params["bhh_f"], params["bhh_b"]))  # (1, 6H)

    tn = _choose_vocab_tile(V, max_tn=max_tn)
    vp = _round_up(V, tn)
    out_wT = jnp.pad(params["out_wT"], ((0, 0), (0, vp - V)))
    out_b = jnp.pad(params["out_b"], ((0, 0), (0, vp - V)))

    return {
        "H": H, "E": E, "V": V, "Vp": vp, "TN": tn,
        "emb_table": bf16(params["emb_table"]),
        "wa_wT": bf16(params["wa_wT"]),
        "ua_wT": bf16(params["ua_wT"]),
        "attn_b": params["wa_b"] + params["ua_b"],
        "va_w": params["va_w"],
        "W_emb": bf16(wih[:E]),
        "W_ctx": bf16(wih[E:]),
        "W_hh": bf16(whh),
        "b_gates": b_gates,
        "out_wT": bf16(out_wT),
        "out_b": out_b,
    }


def decoder_forward(dec_input, hidden, enc_out, packed):
    """dec_input: (B,) int32, hidden: (1, B, H), enc_out: (B, Tx, 2H)."""
    B, Tx, H2 = enc_out.shape
    H = H2 // 2
    V, Vp, TN = packed["V"], packed["Vp"], packed["TN"]

    h0 = hidden[0].astype(jnp.bfloat16)                       # (B, H)
    enc_bf = enc_out.astype(jnp.bfloat16)
    emb = jnp.take(packed["emb_table"], dec_input, axis=0)    # (B, E) bf16

    ins1 = (enc_bf, h0, emb,
            packed["wa_wT"], packed["ua_wT"], packed["attn_b"], packed["va_w"],
            packed["W_emb"], packed["W_ctx"], packed["W_hh"], packed["b_gates"])

    h_both, c_both, h_bf = pl.pallas_call(
        attn_lstm_kernel,
        out_shape=(jax.ShapeDtypeStruct((B, H2), jnp.float32),
                   jax.ShapeDtypeStruct((B, H2), jnp.float32),
                   jax.ShapeDtypeStruct((B, H2), jnp.bfloat16)),
        in_specs=[_full_spec(a.shape) for a in ins1],
        out_specs=(_full_spec((B, H2)), _full_spec((B, H2)),
                   _full_spec((B, H2))),
    )(*ins1)

    # Tiled, pipelined vocab projection; V axis sharded across cores on v7x.
    cost = pl.CostEstimate(
        flops=2 * B * H2 * Vp,
        transcendentals=0,
        bytes_accessed=H2 * Vp * 2 + Vp * 4 + B * Vp * 4 + B * H2 * 2)
    logits_p = pl.pallas_call(
        vocab_proj_kernel,
        out_shape=jax.ShapeDtypeStruct((B, Vp), jnp.float32),
        grid=(Vp // TN,),
        in_specs=[
            pl.BlockSpec((B, H2), lambda j: (0, 0)),
            pl.BlockSpec((H2, TN), lambda j: (0, j)),
            pl.BlockSpec((1, TN), lambda j: (0, j)),
        ],
        out_specs=pl.BlockSpec((B, TN), lambda j: (0, j)),
        compiler_params=pltpu.CompilerParams(
            dimension_semantics=("parallel",),
            vmem_limit_bytes=_vocab_vmem_limit(B, H2, TN)),
        cost_estimate=cost,
    )(h_bf, packed["out_wT"], packed["out_b"])

    logits = logits_p[:, :V]
    h_n = jnp.transpose(h_both.reshape(B, 2, H), (1, 0, 2))   # (2, B, H)
    c_n = jnp.transpose(c_both.reshape(B, 2, H), (1, 0, 2))
    # PyTorch returns out of shape (B, 1, V) and hidden = (h_n, c_n).
    return logits[:, None, :], (h_n, c_n)


# ---------------------------------------------------------------------------
# Pure-JAX reference (original f32 parameter layout) for the correctness check.
# ---------------------------------------------------------------------------
def ref_forward(dec_input, hidden, enc_out, params):
    h0 = hidden[0]
    wa = h0 @ params["wa_wT"] + params["wa_b"][0]
    ua = jnp.einsum("btk,kh->bth", enc_out, params["ua_wT"]) + params["ua_b"][0]
    t = jnp.tanh(ua + wa[:, None, :])
    e = jnp.einsum("bth,h->bt", t, params["va_w"][0]) + params["va_b"][0, 0]
    alphas = jax.nn.softmax(e, axis=1)
    context = jnp.sum(alphas[:, :, None] * enc_out, axis=1)
    emb = params["emb_table"][dec_input]
    x = jnp.concatenate([emb, context], axis=-1)

    def cell(wih, whh, bih, bhh):
        g = x @ wih + bih[0] + h0 @ whh + bhh[0]
        i, f, gg, o = jnp.split(g, 4, axis=-1)
        c = jax.nn.sigmoid(i) * jnp.tanh(gg)
        return jax.nn.sigmoid(o) * jnp.tanh(c), c

    hf, cf = cell(params["wih_f"], params["whh_f"], params["bih_f"], params["bhh_f"])
    hb, cb = cell(params["wih_b"], params["whh_b"], params["bih_b"], params["bhh_b"])
    out = jnp.concatenate([hf, hb], axis=-1) @ params["out_wT"] + params["out_b"][0]
    return out[:, None, :], (jnp.stack([hf, hb]), jnp.stack([cf, cb]))


# ---------------------------------------------------------------------------
# Deterministic parameter init + demo run.
# ---------------------------------------------------------------------------
def init_params(key, hidden_size, vocab_size, embedding_dim):
    H, V, E = hidden_size, vocab_size, embedding_dim
    lstm_in = E + 2 * H
    keys = jax.random.split(key, 16)

    def u(k, shape, scale=0.1):
        return jax.random.uniform(k, shape, jnp.float32, -1.0, 1.0) * scale

    return {
        "wa_wT": u(keys[0], (H, H)),
        "wa_b": u(keys[1], (1, H)),
        "ua_wT": u(keys[2], (2 * H, H)),
        "ua_b": u(keys[3], (1, H)),
        "va_w": u(keys[4], (1, H)),
        "va_b": u(keys[5], (1, 1)),
        "emb_table": u(keys[6], (V, E), scale=1.0),
        "wih_f": u(keys[7], (lstm_in, 4 * H)),
        "whh_f": u(keys[8], (H, 4 * H)),
        "bih_f": u(keys[9], (1, 4 * H)),
        "bhh_f": u(keys[10], (1, 4 * H)),
        "wih_b": u(keys[11], (lstm_in, 4 * H)),
        "whh_b": u(keys[12], (H, 4 * H)),
        "bih_b": u(keys[13], (1, 4 * H)),
        "bhh_b": u(keys[14], (1, 4 * H)),
        "out_wT": u(keys[15], (2 * H, V)),
        "out_b": jnp.zeros((1, V), jnp.float32),
    }


if __name__ == "__main__":
    # Small demo shapes, but chosen so the tiling logic is exercised:
    # B=8 (full sublanes), 2H=128 (lane-aligned gate slices), V=2000 so the
    # vocab tile chooser picks TN=1024 -> Vp=2048, 2 tiles (even grid for v7x
    # megacore, 2.3% padding waste), lane-dense logits stores.
    B, Tx, H, E, V = 8, 16, 64, 64, 2000

    root = jax.random.PRNGKey(0)
    k_params, k_enc, k_hid, k_tok = jax.random.split(root, 4)

    params = init_params(k_params, hidden_size=H, vocab_size=V, embedding_dim=E)
    packed = pack_params(params, max_tn=2048)

    enc_out = jax.random.normal(k_enc, (B, Tx, 2 * H), jnp.float32)
    hidden = jax.random.normal(k_hid, (1, B, H), jnp.float32)
    dec_input = jax.random.randint(k_tok, (B,), 0, V, jnp.int32)

    fwd = jax.jit(functools.partial(decoder_forward, packed=packed))
    out, (h_n, c_n) = fwd(dec_input, hidden, enc_out)
    jax.block_until_ready((out, h_n, c_n))

    # Correctness check against the f32 pure-JAX reference (bf16 weights ->
    # loose-but-safe tolerance at these magnitudes).
    ref_out, (ref_h, ref_c) = ref_forward(dec_input, hidden, enc_out, params)
    assert jnp.allclose(out, ref_out, rtol=2e-2, atol=2e-2)
    assert jnp.allclose(h_n, ref_h, rtol=2e-2, atol=2e-2)
    assert jnp.allclose(c_n, ref_c, rtol=2e-2, atol=2e-2)

    print("KERNEL_OK")
</pallas_src>

<mosaic_0001>
module attributes {stable_mosaic.version = 11 : i64} {
  func.func @attn_lstm_kernel(%arg0: memref<8x16x128xbf16, #tpu.memory_space<vmem>>, %arg1: memref<8x64xbf16, #tpu.memory_space<vmem>>, %arg2: memref<8x64xbf16, #tpu.memory_space<vmem>>, %arg3: memref<64x64xbf16, #tpu.memory_space<vmem>>, %arg4: memref<128x64xbf16, #tpu.memory_space<vmem>>, %arg5: memref<1x64xf32, #tpu.memory_space<vmem>>, %arg6: memref<1x64xf32, #tpu.memory_space<vmem>>, %arg7: memref<64x384xbf16, #tpu.memory_space<vmem>>, %arg8: memref<128x384xbf16, #tpu.memory_space<vmem>>, %arg9: memref<64x384xbf16, #tpu.memory_space<vmem>>, %arg10: memref<1x384xf32, #tpu.memory_space<vmem>>, %arg11: memref<8x128xf32, #tpu.memory_space<vmem>>, %arg12: memref<8x128xf32, #tpu.memory_space<vmem>>, %arg13: memref<8x128xbf16, #tpu.memory_space<vmem>>) attributes {dimension_semantics = [], scalar_prefetch = 0 : i64, scratch_operands = 0 : i64, tpu.core_type = #tpu.core_type<tc>} {
    %c0 = arith.constant 0 : index
    %c0_0 = arith.constant 0 : index
    %c0_1 = arith.constant 0 : index
    %0 = vector.load %arg0[%c0, %c0_0, %c0_1] : memref<8x16x128xbf16, #tpu.memory_space<vmem>>, vector<8x16x128xbf16>
    %c0_2 = arith.constant 0 : index
    %c0_3 = arith.constant 0 : index
    %1 = vector.load %arg1[%c0_2, %c0_3] : memref<8x64xbf16, #tpu.memory_space<vmem>>, vector<8x64xbf16>
    %c0_4 = arith.constant 0 : index
    %c0_5 = arith.constant 0 : index
    %2 = vector.load %arg3[%c0_4, %c0_5] : memref<64x64xbf16, #tpu.memory_space<vmem>>, vector<64x64xbf16>
    %cst = arith.constant dense<0.000000e+00> : vector<8x64xf32>
    %3 = tpu.matmul %1, %2, %cst {dimension_numbers = #tpu.dot_dimension_numbers<[1], [0], [0], [1], [0, 0, 1, 1], [], []>} : vector<8x64xbf16>, vector<64x64xbf16>, vector<8x64xf32> -> vector<8x64xf32>
    %c0_6 = arith.constant 0 : index
    %c0_7 = arith.constant 0 : index
    %4 = vector.load %arg5[%c0_6, %c0_7] : memref<1x64xf32, #tpu.memory_space<vmem>>, vector<1x64xf32>
    %5 = vector.broadcast %4 : vector<1x64xf32> to vector<8x64xf32>
    %6 = arith.addf %3, %5 : vector<8x64xf32>
    %7 = vector.shape_cast %0 : vector<8x16x128xbf16> to vector<128x128xbf16>
    %c0_8 = arith.constant 0 : index
    %c0_9 = arith.constant 0 : index
    %8 = vector.load %arg4[%c0_8, %c0_9] : memref<128x64xbf16, #tpu.memory_space<vmem>>, vector<128x64xbf16>
    %cst_10 = arith.constant dense<0.000000e+00> : vector<128x64xf32>
    %9 = tpu.matmul %7, %8, %cst_10 {dimension_numbers = #tpu.dot_dimension_numbers<[1], [0], [0], [1], [0, 0, 1, 1], [], []>} : vector<128x128xbf16>, vector<128x64xbf16>, vector<128x64xf32> -> vector<128x64xf32>
    %10 = vector.shape_cast %9 : vector<128x64xf32> to vector<8x16x64xf32>
    %11 = vector.shape_cast %6 : vector<8x64xf32> to vector<8x1x64xf32>
    %12 = vector.broadcast %11 : vector<8x1x64xf32> to vector<8x16x64xf32>
    %13 = arith.addf %10, %12 : vector<8x16x64xf32>
    %14 = math.tanh %13 : vector<8x16x64xf32>
    %c0_11 = arith.constant 0 : index
    %c0_12 = arith.constant 0 : index
    %15 = vector.load %arg6[%c0_11, %c0_12] : memref<1x64xf32, #tpu.memory_space<vmem>>, vector<1x64xf32>
    %16 = vector.shape_cast %15 : vector<1x64xf32> to vector<1x1x64xf32>
    %17 = vector.broadcast %16 : vector<1x1x64xf32> to vector<8x16x64xf32>
    %18 = arith.mulf %14, %17 : vector<8x16x64xf32>
    %cst_13 = arith.constant dense<0.000000e+00> : vector<8x16xf32>
    %19 = vector.multi_reduction <add>, %18, %cst_13 [2] : vector<8x16x64xf32> to vector<8x16xf32>
    %cst_14 = arith.constant dense<0xFF800000> : vector<8xf32>
    %20 = vector.multi_reduction <maximumf>, %19, %cst_14 [1] : vector<8x16xf32> to vector<8xf32>
    %21 = vector.shape_cast %20 : vector<8xf32> to vector<8x1xf32>
    %22 = vector.broadcast %21 : vector<8x1xf32> to vector<8x16xf32>
    %23 = arith.subf %19, %22 : vector<8x16xf32>
    %24 = math.exp %23 : vector<8x16xf32>
    %cst_15 = arith.constant dense<0.000000e+00> : vector<8xf32>
    %25 = vector.multi_reduction <add>, %24, %cst_15 [1] : vector<8x16xf32> to vector<8xf32>
    %26 = vector.shape_cast %25 : vector<8xf32> to vector<8x1xf32>
    %27 = vector.broadcast %26 : vector<8x1xf32> to vector<8x16xf32>
    %28 = arith.divf %24, %27 : vector<8x16xf32>
    %29 = vector.shape_cast %28 : vector<8x16xf32> to vector<8x1x16xf32>
    %30 = arith.extf %0 : vector<8x16x128xbf16> to vector<8x16x128xf32>
    "tpu.trace_start"() <{level = 10 : i32, message = "bqt,btd->bqd"}> : () -> ()
    %cst_16 = arith.constant dense<0.000000e+00> : vector<8x1x128xf32>
    %31 = tpu.matmul %29, %30, %cst_16 {dimension_numbers = #tpu.dot_dimension_numbers<[2], [1], [1], [2], [0, 0, 0, 1, 1, 2], [0], [0]>} : vector<8x1x16xf32>, vector<8x16x128xf32>, vector<8x1x128xf32> -> vector<8x1x128xf32>
    "tpu.trace_stop"() : () -> ()
    %32 = vector.shape_cast %31 : vector<8x1x128xf32> to vector<8x128xf32>
    %c0_17 = arith.constant 0 : index
    %c0_18 = arith.constant 0 : index
    %33 = vector.load %arg2[%c0_17, %c0_18] : memref<8x64xbf16, #tpu.memory_space<vmem>>, vector<8x64xbf16>
    %c0_19 = arith.constant 0 : index
    %c0_20 = arith.constant 0 : index
    %34 = vector.load %arg7[%c0_19, %c0_20] : memref<64x384xbf16, #tpu.memory_space<vmem>>, vector<64x384xbf16>
    %cst_21 = arith.constant dense<0.000000e+00> : vector<8x384xf32>
    %35 = tpu.matmul %33, %34, %cst_21 {dimension_numbers = #tpu.dot_dimension_numbers<[1], [0], [0], [1], [0, 0, 1, 1], [], []>} : vector<8x64xbf16>, vector<64x384xbf16>, vector<8x384xf32> -> vector<8x384xf32>
    %36 = arith.truncf %32 : vector<8x128xf32> to vector<8x128xbf16>
    %c0_22 = arith.constant 0 : index
    %c0_23 = arith.constant 0 : index
    %37 = vector.load %arg8[%c0_22, %c0_23] : memref<128x384xbf16, #tpu.memory_space<vmem>>, vector<128x384xbf16>
    %cst_24 = arith.constant dense<0.000000e+00> : vector<8x384xf32>
    %38 = tpu.matmul %36, %37, %cst_24 {dimension_numbers = #tpu.dot_dimension_numbers<[1], [0], [0], [1], [0, 0, 1, 1], [], []>} : vector<8x128xbf16>, vector<128x384xbf16>, vector<8x384xf32> -> vector<8x384xf32>
    %39 = arith.addf %35, %38 : vector<8x384xf32>
    %c0_25 = arith.constant 0 : index
    %c0_26 = arith.constant 0 : index
    %40 = vector.load %arg9[%c0_25, %c0_26] : memref<64x384xbf16, #tpu.memory_space<vmem>>, vector<64x384xbf16>
    %cst_27 = arith.constant dense<0.000000e+00> : vector<8x384xf32>
    %41 = tpu.matmul %1, %40, %cst_27 {dimension_numbers = #tpu.dot_dimension_numbers<[1], [0], [0], [1], [0, 0, 1, 1], [], []>} : vector<8x64xbf16>, vector<64x384xbf16>, vector<8x384xf32> -> vector<8x384xf32>
    %42 = arith.addf %39, %41 : vector<8x384xf32>
    %c0_28 = arith.constant 0 : index
    %c0_29 = arith.constant 0 : index
    %43 = vector.load %arg10[%c0_28, %c0_29] : memref<1x384xf32, #tpu.memory_space<vmem>>, vector<1x384xf32>
    %44 = vector.broadcast %43 : vector<1x384xf32> to vector<8x384xf32>
    %45 = arith.addf %42, %44 : vector<8x384xf32>
    %46 = vector.extract_strided_slice %45 {offsets = [0, 0], sizes = [8, 128], strides = [1, 1]} : vector<8x384xf32> to vector<8x128xf32>
    %47 = arith.negf %46 : vector<8x128xf32>
    %48 = math.exp %47 : vector<8x128xf32>
    %cst_30 = arith.constant 1.000000e+00 : f32
    %49 = vector.broadcast %cst_30 : f32 to vector<8x128xf32>
    %50 = arith.addf %49, %48 : vector<8x128xf32>
    %51 = arith.divf %49, %50 : vector<8x128xf32>
    %52 = vector.extract_strided_slice %45 {offsets = [0, 128], sizes = [8, 128], strides = [1, 1]} : vector<8x384xf32> to vector<8x128xf32>
    %53 = math.tanh %52 : vector<8x128xf32>
    %54 = vector.extract_strided_slice %45 {offsets = [0, 256], sizes = [8, 128], strides = [1, 1]} : vector<8x384xf32> to vector<8x128xf32>
    %55 = arith.negf %54 : vector<8x128xf32>
    %56 = math.exp %55 : vector<8x128xf32>
    %cst_31 = arith.constant 1.000000e+00 : f32
    %57 = vector.broadcast %cst_31 : f32 to vector<8x128xf32>
    %58 = arith.addf %57, %56 : vector<8x128xf32>
    %59 = arith.divf %57, %58 : vector<8x128xf32>
    %60 = arith.mulf %51, %53 : vector<8x128xf32>
    %61 = math.tanh %60 : vector<8x128xf32>
    %62 = arith.mulf %59, %61 : vector<8x128xf32>
    %c0_32 = arith.constant 0 : index
    %c0_33 = arith.constant 0 : index
    %63 = vector.load %arg11[%c0_32, %c0_33] : memref<8x128xf32, #tpu.memory_space<vmem>>, vector<8x128xf32>
    tpu.vector_store %arg11[%c0_32, %c0_33], %62 {strides = array<i32>} : memref<8x128xf32, #tpu.memory_space<vmem>>, vector<8x128xf32>,
    %c0_34 = arith.constant 0 : index
    %c0_35 = arith.constant 0 : index
    %64 = vector.load %arg12[%c0_34, %c0_35] : memref<8x128xf32, #tpu.memory_space<vmem>>, vector<8x128xf32>
    tpu.vector_store %arg12[%c0_34, %c0_35], %60 {strides = array<i32>} : memref<8x128xf32, #tpu.memory_space<vmem>>, vector<8x128xf32>,
    %65 = arith.truncf %62 : vector<8x128xf32> to vector<8x128xbf16>
    %c0_36 = arith.constant 0 : index
    %c0_37 = arith.constant 0 : index
    %66 = vector.load %arg13[%c0_36, %c0_37] : memref<8x128xbf16, #tpu.memory_space<vmem>>, vector<8x128xbf16>
    tpu.vector_store %arg13[%c0_36, %c0_37], %65 {strides = array<i32>} : memref<8x128xbf16, #tpu.memory_space<vmem>>, vector<8x128xbf16>,
    return
  }
}

module attributes {stable_mosaic.version = 11 : i64} {
  func.func @vocab_proj_kernel(%arg0: i32, %arg1: memref<8x128xbf16, #tpu.memory_space<vmem>>, %arg2: memref<128x1024xbf16, #tpu.memory_space<vmem>>, %arg3: memref<1x1024xf32, #tpu.memory_space<vmem>>, %arg4: memref<8x1024xf32, #tpu.memory_space<vmem>>) attributes {dimension_semantics = [#tpu.dimension_semantics<parallel>], iteration_bounds = array<i64: 2>, scalar_prefetch = 0 : i64, scratch_operands = 0 : i64, tpu.core_type = #tpu.core_type<tc>, window_params = [{pipeline_mode = #tpu.pipeline_mode<synchronous>, transform_indices = @transform_0, window_bounds = array<i64: 8, 128>}, {transform_indices = @transform_1, window_bounds = array<i64: 128, 1024>}, {transform_indices = @transform_2, window_bounds = array<i64: 1, 1024>}, {transform_indices = @transform_3, window_bounds = array<i64: 8, 1024>}]} {
    %c0 = arith.constant 0 : index
    %c0_0 = arith.constant 0 : index
    %0 = vector.load %arg1[%c0, %c0_0] : memref<8x128xbf16, #tpu.memory_space<vmem>>, vector<8x128xbf16>
    %c0_1 = arith.constant 0 : index
    %c0_2 = arith.constant 0 : index
    %1 = vector.load %arg2[%c0_1, %c0_2] : memref<128x1024xbf16, #tpu.memory_space<vmem>>, vector<128x1024xbf16>
    %cst = arith.constant dense<0.000000e+00> : vector<8x1024xf32>
    %2 = tpu.matmul %0, %1, %cst {dimension_numbers = #tpu.dot_dimension_numbers<[1], [0], [0], [1], [0, 0, 1, 1], [], []>} : vector<8x128xbf16>, vector<128x1024xbf16>, vector<8x1024xf32> -> vector<8x1024xf32>
    %c0_3 = arith.constant 0 : index
    %c0_4 = arith.constant 0 : index
    %3 = vector.load %arg3[%c0_3, %c0_4] : memref<1x1024xf32, #tpu.memory_space<vmem>>, vector<1x1024xf32>
    %4 = vector.broadcast %3 : vector<1x1024xf32> to vector<8x1024xf32>
    %5 = arith.addf %2, %4 : vector<8x1024xf32>
    %c0_5 = arith.constant 0 : index
    %c0_6 = arith.constant 0 : index
    %6 = vector.load %arg4[%c0_5, %c0_6] : memref<8x1024xf32, #tpu.memory_space<vmem>>, vector<8x1024xf32>
    tpu.vector_store %arg4[%c0_5, %c0_6], %5 {strides = array<i32>} : memref<8x1024xf32, #tpu.memory_space<vmem>>, vector<8x1024xf32>,
    return
  }
  func.func @transform_0(%arg0: i32) -> (i32, i32) {
    %c0_i32 = arith.constant 0 : i32
    %c0_i32_0 = arith.constant 0 : i32
    %c0_i32_1 = arith.constant 0 : i32
    return %c0_i32, %c0_i32_0 : i32, i32
  }
  func.func @transform_1(%arg0: i32) -> (i32, i32) {
    %c0_i32 = arith.constant 0 : i32
    %c0_i32_0 = arith.constant 0 : i32
    return %c0_i32, %arg0 : i32, i32
  }
  func.func @transform_2(%arg0: i32) -> (i32, i32) {
    %c0_i32 = arith.constant 0 : i32
    %c0_i32_0 = arith.constant 0 : i32
    return %c0_i32, %arg0 : i32, i32
  }
  func.func @transform_3(%arg0: i32) -> (i32, i32) {
    %c0_i32 = arith.constant 0 : i32
    %c0_i32_0 = arith.constant 0 : i32
    return %c0_i32, %arg0 : i32, i32
  }
}

</mosaic_0001>

<bundles_post_ra>
// kernel: decoder_forward.3
= control target key start
LH: loop header
LB: loop body
LE: loop exit
PB: predicated region body
PF: predicated region fallthrough
CT: control target
= control target key end

     0   :  { %s1158_s12 = smov 0   ;;  %s1160_s13 = smov 0   ;;  %s1434_s0 = inlined_call_operand.vmem [shape: bf16[8,128], index: 0, kind: input, shape index: {}]   ;;  %s1435_s1 = inlined_call_operand.vmem [shape: bf16[128,2048], index: 1, kind: input, shape index: {}]   ;;  %s1436_s2 = inlined_call_operand.vmem [shape: f32[1,2048], index: 2, kind: input, shape index: {}]   ;;  %s1437_s3 = inlined_call_operand.vmem [shape: f32[8,2048], index: 3, kind: output, shape index: {}]  }
   0x1   :  { %s1162_s14 = smov 0  }
   0x2 LB: > { %s1009_s15 = sadd.s32 4294967295, %s1135_s14   ;;  %s1175_s16 = sadd.s32 1, %s1135_s14   ;;  %s1135_s14 = sphi %s1162_s14, %s1440_s14   ;;  %s1131_s13 = sphi %s1160_s13, %s1439_s13   ;;  %s1127_s12 = sphi %s1158_s12, %s1438_s12  }
   0x3   : > { %s38_s17 = ssub.s32 %s1135_s14, %s1175_s16  ;;  %s41_s18 = sadd.s32 1, %s1131_s13 }
   0x4   : > { %p39_p0 = scmp.eq.s32.totalorder %s38_s17, 0  ;;  %p48_p1 = scmp.ne.s32.totalorder %s1131_s13, %s1127_s12 }
   0x5   : > { %p49_p2 = scmp.eq.s32.totalorder %s1135_s14, 0  ;;  %p1012_p4 = scmp.ge.s32.totalorder %s1135_s14, 2 }
   0x6   : > { %s1184_s19 = scalar_select %p39_p0, %s1131_s13, %s41_s18  }
   0x7   : > { %p50_p3 = por %p49_p2, %p48_p1  ;;  %129 = sbr.rel (%p1012_p4) target bundleno = 50 (0x32), region = 20 }
   0xe   : > { %132 = sbr.rel (!%p50_p3) target bundleno = 50 (0x32), region = 24  ;;  %s134_s20 = sand.u32 (%p50_p3), 1, %s1131_s13  }
   0xf   : > { %s1087_s21 = sshll.u32 (%p50_p3), %s1135_s14, 5  ;;  %s1013_s22 = sshll.u32 (%p50_p3), %s134_s20, 9 }
  0x10   : > { %s1192_s25 = scalar_lea.vmem (%p50_p3), %s1435_s1, %s1087_s21  ;;  %s1197_s26 = scalar_lea.vmem (%p50_p3), [#allocation2], %s1013_s22 }
  0x11   : > { %v152_v0 = vld [vmem:[%s1192_s25] sm:$0xff] (%p50_p3)  ;;  %v154_v1 = vld [vmem:[%s1192_s25 + $0x8] sm:$0xff] (%p50_p3)  ;;  %v156_v2 = vld [vmem:[%s1192_s25 + $0x10] sm:$0xff] (%p50_p3) }
  0x12   : > { %153 = vst [vmem:[%s1197_s26] sm:$0xff] (%p50_p3), %v152_v0  ;;  %155 = vst [vmem:[%s1197_s26 + $0x8] sm:$0xff] (%p50_p3), %v154_v1  ;;  %v158_v3 = vld [vmem:[%s1192_s25 + $0x18] sm:$0xff] (%p50_p3)  ;;  %v160_v4 = vld [vmem:[%s1192_s25 + $0x40] sm:$0xff] (%p50_p3) }
  0x13   : > { %157 = vst [vmem:[%s1197_s26 + $0x10] sm:$0xff] (%p50_p3), %v156_v2  ;;  %v162_v5 = vld [vmem:[%s1192_s25 + $0x48] sm:$0xff] (%p50_p3)  ;;  %159 = vst [vmem:[%s1197_s26 + $0x18] sm:$0xff] (%p50_p3), %v158_v3  ;;  %v164_v6 = vld [vmem:[%s1192_s25 + $0x50] sm:$0xff] (%p50_p3) }
  0x14   : > { %161 = vst [vmem:[%s1197_s26 + $0x20] sm:$0xff] (%p50_p3), %v160_v4  ;;  %163 = vst [vmem:[%s1197_s26 + $0x28] sm:$0xff] (%p50_p3), %v162_v5  ;;  %v166_v7 = vld [vmem:[%s1192_s25 + $0x58] sm:$0xff] (%p50_p3)  ;;  %v168_v8 = vld [vmem:[%s1192_s25 + $0x80] sm:$0xff] (%p50_p3) }
  0x15   : > { %165 = vst [vmem:[%s1197_s26 + $0x30] sm:$0xff] %v164_v6  ;;  %167 = vst [vmem:[%s1197_s26 + $0x38] sm:$0xff] %v166_v7  ;;  %v170_v9 = vld [vmem:[%s1192_s25 + $0x88] sm:$0xff]  ;;  %v172_v10 = vld [vmem:[%s1192_s25 + $0x90] sm:$0xff] }
  0x16   : > { %169 = vst [vmem:[%s1197_s26 + $0x40] sm:$0xff] %v168_v8  ;;  %v174_v11 = vld [vmem:[%s1192_s25 + $0x98] sm:$0xff]  ;;  %171 = vst [vmem:[%s1197_s26 + $0x48] sm:$0xff] %v170_v9  ;;  %v176_v12 = vld [vmem:[%s1192_s25 + $0xc0] sm:$0xff] }
  0x17   : > { %173 = vst [vmem:[%s1197_s26 + $0x50] sm:$0xff] %v172_v10  ;;  %175 = vst [vmem:[%s1197_s26 + $0x58] sm:$0xff] %v174_v11  ;;  %v178_v13 = vld [vmem:[%s1192_s25 + $0xc8] sm:$0xff]  ;;  %v180_v14 = vld [vmem:[%s1192_s25 + $0xd0] sm:$0xff] }
  0x18   : > { %177 = vst [vmem:[%s1197_s26 + $0x60] sm:$0xff] %v176_v12  ;;  %179 = vst [vmem:[%s1197_s26 + $0x68] sm:$0xff] %v178_v13  ;;  %v182_v15 = vld [vmem:[%s1192_s25 + $0xd8] sm:$0xff]  ;;  %v184_v16 = vld [vmem:[%s1192_s25 + $0x100] sm:$0xff] }
  0x19   : > { %181 = vst [vmem:[%s1197_s26 + $0x70] sm:$0xff] %v180_v14  ;;  %v186_v17 = vld [vmem:[%s1192_s25 + $0x108] sm:$0xff]  ;;  %183 = vst [vmem:[%s1197_s26 + $0x78] sm:$0xff] %v182_v15  ;;  %v188_v18 = vld [vmem:[%s1192_s25 + $0x110] sm:$0xff] }
  0x1a   : > { %185 = vst [vmem:[%s1197_s26 + $0x80] sm:$0xff] %v184_v16  ;;  %187 = vst [vmem:[%s1197_s26 + $0x88] sm:$0xff] %v186_v17  ;;  %v190_v19 = vld [vmem:[%s1192_s25 + $0x118] sm:$0xff]  ;;  %v192_v20 = vld [vmem:[%s1192_s25 + $0x140] sm:$0xff] }
  0x1b   : > { %189 = vst [vmem:[%s1197_s26 + $0x90] sm:$0xff] %v188_v18  ;;  %191 = vst [vmem:[%s1197_s26 + $0x98] sm:$0xff] %v190_v19  ;;  %v194_v21 = vld [vmem:[%s1192_s25 + $0x148] sm:$0xff]  ;;  %v196_v22 = vld [vmem:[%s1192_s25 + $0x150] sm:$0xff] }
  0x1c   : > { %193 = vst [vmem:[%s1197_s26 + $0xa0] sm:$0xff] %v192_v20  ;;  %v198_v23 = vld [vmem:[%s1192_s25 + $0x158] sm:$0xff]  ;;  %195 = vst [vmem:[%s1197_s26 + $0xa8] sm:$0xff] %v194_v21  ;;  %v200_v24 = vld [vmem:[%s1192_s25 + $0x180] sm:$0xff] }
  0x1d   : > { %197 = vst [vmem:[%s1197_s26 + $0xb0] sm:$0xff] %v196_v22  ;;  %199 = vst [vmem:[%s1197_s26 + $0xb8] sm:$0xff] %v198_v23  ;;  %v202_v25 = vld [vmem:[%s1192_s25 + $0x188] sm:$0xff]  ;;  %v204_v26 = vld [vmem:[%s1192_s25 + $0x190] sm:$0xff] }
  0x1e   : > { %201 = vst [vmem:[%s1197_s26 + $0xc0] sm:$0xff] %v200_v24  ;;  %203 = vst [vmem:[%s1197_s26 + $0xc8] sm:$0xff] %v202_v25  ;;  %v206_v27 = vld [vmem:[%s1192_s25 + $0x198] sm:$0xff]  ;;  %v208_v28 = vld [vmem:[%s1192_s25 + $0x1c0] sm:$0xff] }
  0x1f   : > { %205 = vst [vmem:[%s1197_s26 + $0xd0] sm:$0xff] %v204_v26  ;;  %v210_v29 = vld [vmem:[%s1192_s25 + $0x1c8] sm:$0xff]  ;;  %207 = vst [vmem:[%s1197_s26 + $0xd8] sm:$0xff] %v206_v27  ;;  %v212_v30 = vld [vmem:[%s1192_s25 + $0x1d0] sm:$0xff] }
  0x20   : > { %209 = vst [vmem:[%s1197_s26 + $0xe0] sm:$0xff] %v208_v28  ;;  %211 = vst [vmem:[%s1197_s26 + $0xe8] sm:$0xff] %v210_v29  ;;  %v214_v31 = vld [vmem:[%s1192_s25 + $0x1d8] sm:$0xff]  ;;  %v216_v32 = vld [vmem:[%s1192_s25 + $0x200] sm:$0xff] }
  0x21   : > { %213 = vst [vmem:[%s1197_s26 + $0xf0] sm:$0xff] %v212_v30  ;;  %215 = vst [vmem:[%s1197_s26 + $0xf8] sm:$0xff] %v214_v31  ;;  %v218_v33 = vld [vmem:[%s1192_s25 + $0x208] sm:$0xff]  ;;  %v220_v34 = vld [vmem:[%s1192_s25 + $0x210] sm:$0xff] }
  0x22   : > { %217 = vst [vmem:[%s1197_s26 + $0x100] sm:$0xff] %v216_v32  ;;  %v222_v35 = vld [vmem:[%s1192_s25 + $0x218] sm:$0xff]  ;;  %219 = vst [vmem:[%s1197_s26 + $0x108] sm:$0xff] %v218_v33  ;;  %v224_v36 = vld [vmem:[%s1192_s25 + $0x240] sm:$0xff] }
  0x23   : > { %221 = vst [vmem:[%s1197_s26 + $0x110] sm:$0xff] %v220_v34  ;;  %223 = vst [vmem:[%s1197_s26 + $0x118] sm:$0xff] %v222_v35  ;;  %v226_v37 = vld [vmem:[%s1192_s25 + $0x248] sm:$0xff]  ;;  %v228_v38 = vld [vmem:[%s1192_s25 + $0x250] sm:$0xff] }
  0x24   : > { %225 = vst [vmem:[%s1197_s26 + $0x120] sm:$0xff] %v224_v36  ;;  %227 = vst [vmem:[%s1197_s26 + $0x128] sm:$0xff] %v226_v37  ;;  %v230_v39 = vld [vmem:[%s1192_s25 + $0x258] sm:$0xff]  ;;  %v232_v40 = vld [vmem:[%s1192_s25 + $0x280] sm:$0xff] }
  0x25   : > { %229 = vst [vmem:[%s1197_s26 + $0x130] sm:$0xff] %v228_v38  ;;  %v234_v41 = vld [vmem:[%s1192_s25 + $0x288] sm:$0xff]  ;;  %231 = vst [vmem:[%s1197_s26 + $0x138] sm:$0xff] %v230_v39  ;;  %v236_v42 = vld [vmem:[%s1192_s25 + $0x290] sm:$0xff] }
  0x26   : > { %233 = vst [vmem:[%s1197_s26 + $0x140] sm:$0xff] %v232_v40  ;;  %235 = vst [vmem:[%s1197_s26 + $0x148] sm:$0xff] %v234_v41  ;;  %v238_v43 = vld [vmem:[%s1192_s25 + $0x298] sm:$0xff]  ;;  %v240_v44 = vld [vmem:[%s1192_s25 + $0x2c0] sm:$0xff] }
  0x27   : > { %237 = vst [vmem:[%s1197_s26 + $0x150] sm:$0xff] %v236_v42  ;;  %239 = vst [vmem:[%s1197_s26 + $0x158] sm:$0xff] %v238_v43  ;;  %v242_v45 = vld [vmem:[%s1192_s25 + $0x2c8] sm:$0xff]  ;;  %v244_v46 = vld [vmem:[%s1192_s25 + $0x2d0] sm:$0xff] }
  0x28   : > { %241 = vst [vmem:[%s1197_s26 + $0x160] sm:$0xff] %v240_v44  ;;  %v246_v47 = vld [vmem:[%s1192_s25 + $0x2d8] sm:$0xff]  ;;  %243 = vst [vmem:[%s1197_s26 + $0x168] sm:$0xff] %v242_v45  ;;  %v248_v48 = vld [vmem:[%s1192_s25 + $0x300] sm:$0xff] }
  0x29   : > { %245 = vst [vmem:[%s1197_s26 + $0x170] sm:$0xff] %v244_v46  ;;  %247 = vst [vmem:[%s1197_s26 + $0x178] sm:$0xff] %v246_v47  ;;  %v250_v49 = vld [vmem:[%s1192_s25 + $0x308] sm:$0xff]  ;;  %v252_v50 = vld [vmem:[%s1192_s25 + $0x310] sm:$0xff] }
  0x2a   : > { %249 = vst [vmem:[%s1197_s26 + $0x180] sm:$0xff] %v248_v48  ;;  %251 = vst [vmem:[%s1197_s26 + $0x188] sm:$0xff] %v250_v49  ;;  %v254_v51 = vld [vmem:[%s1192_s25 + $0x318] sm:$0xff]  ;;  %v256_v52 = vld [vmem:[%s1192_s25 + $0x340] sm:$0xff] }
  0x2b   : > { %253 = vst [vmem:[%s1197_s26 + $0x190] sm:$0xff] %v252_v50  ;;  %v258_v53 = vld [vmem:[%s1192_s25 + $0x348] sm:$0xff]  ;;  %255 = vst [vmem:[%s1197_s26 + $0x198] sm:$0xff] %v254_v51  ;;  %v260_v54 = vld [vmem:[%s1192_s25 + $0x350] sm:$0xff] }
  0x2c   : > { %257 = vst [vmem:[%s1197_s26 + $0x1a0] sm:$0xff] %v256_v52  ;;  %259 = vst [vmem:[%s1197_s26 + $0x1a8] sm:$0xff] %v258_v53  ;;  %v262_v55 = vld [vmem:[%s1192_s25 + $0x358] sm:$0xff]  ;;  %v264_v56 = vld [vmem:[%s1192_s25 + $0x380] sm:$0xff] }
  0x2d   : > { %261 = vst [vmem:[%s1197_s26 + $0x1b0] sm:$0xff] %v260_v54  ;;  %263 = vst [vmem:[%s1197_s26 + $0x1b8] sm:$0xff] %v262_v55  ;;  %v266_v57 = vld [vmem:[%s1192_s25 + $0x388] sm:$0xff]  ;;  %v268_v58 = vld [vmem:[%s1192_s25 + $0x390] sm:$0xff] }
  0x2e   : > { %265 = vst [vmem:[%s1197_s26 + $0x1c0] sm:$0xff] %v264_v56  ;;  %v270_v59 = vld [vmem:[%s1192_s25 + $0x398] sm:$0xff]  ;;  %267 = vst [vmem:[%s1197_s26 + $0x1c8] sm:$0xff] %v266_v57  ;;  %v272_v60 = vld [vmem:[%s1192_s25 + $0x3c0] sm:$0xff] }
  0x2f   : > { %269 = vst [vmem:[%s1197_s26 + $0x1d0] sm:$0xff] %v268_v58  ;;  %271 = vst [vmem:[%s1197_s26 + $0x1d8] sm:$0xff] %v270_v59  ;;  %v274_v61 = vld [vmem:[%s1192_s25 + $0x3c8] sm:$0xff]  ;;  %v276_v62 = vld [vmem:[%s1192_s25 + $0x3d0] sm:$0xff] }
  0x30   : > { %273 = vst [vmem:[%s1197_s26 + $0x1e0] sm:$0xff] %v272_v60  ;;  %275 = vst [vmem:[%s1197_s26 + $0x1e8] sm:$0xff] %v274_v61  ;;  %v278_v63 = vld [vmem:[%s1192_s25 + $0x3d8] sm:$0xff] }
  0x31   : > { %277 = vst [vmem:[%s1197_s26 + $0x1f0] sm:$0xff] %v276_v62  ;;  %279 = vst [vmem:[%s1197_s26 + $0x1f8] sm:$0xff] %v278_v63 }
  0x32 PF: > { %p1016_p5 = scmp.ge.s32.totalorder %s1135_s14, 1  ;;  %p292_p6 = scmp.lt.s32.totalorder %s1135_s14, 3 }
  0x34   : > { %p293_p7 = pnand %p1016_p5, %p292_p6 }
  0x35   : > { %s299_s27 = sand.u32 (!%p293_p7), 1, %s1127_s12   ;;  %v1137_v0 = vmov (!%p293_p7), 0   ;;  %s1018_s5 = sshll.u32 (!%p293_p7), %s1009_s15, 3 }
  0x36   : > { %296 = sbr.rel (%p293_p7) target bundleno = 340 (0x154), region = 51  ;;  %s1017_s28 = sshll.u32 (!%p293_p7), %s299_s27, 9  ;;  %798 = vmatprep.mubr.bf16.mxu0 (!%p293_p7), %v1137_v0  ;;  %839 = vmatprep.mubr.bf16.mxu1 (!%p293_p7), %v1137_v0 }
  0x37   : > { %s1329_s29 = scalar_lea.vmem (!%p293_p7), [#allocation2], %s1017_s28  ;;  %p328_p8 = scmp.lt.s32.totalorder (!%p293_p7), %s1018_s5, 15 }
  0x38   : > { %v340_v1 = vld [vmem:[%s1329_s29] sm:$0xff] (!%p293_p7)  ;;  %v341_v3 = vld [vmem:[%s1329_s29 + $0x8] sm:$0xff] (!%p293_p7)  ;;  %v342_v63 = vld [vmem:[%s1329_s29 + $0x10] sm:$0xff] (!%p293_p7) }
  0x39   : > { %v344_v2 = vld [vmem:[%s1329_s29 + $0x20] sm:$0xff] (!%p293_p7)  ;;  %v345_v5 = vld [vmem:[%s1329_s29 + $0x28] sm:$0xff] (!%p293_p7) }
  0x3a   : > { %v1022_v4 = vcombine.high (!%p293_p7), %v340_v1, %v344_v2  ;;  %v1021_v6 = vcombine.low (!%p293_p7), %v340_v1, %v344_v2  ;;  %v348_v7 = vld [vmem:[%s1329_s29 + $0x40] sm:$0xff] (!%p293_p7)  ;;  %v1024_v9 = vcombine.high (!%p293_p7), %v341_v3, %v345_v5  ;;  %v1023_v10 = vcombine.low (!%p293_p7), %v341_v3, %v345_v5  ;;  %v349_v12 = vld [vmem:[%s1329_s29 + $0x48] sm:$0xff] (!%p293_p7)  ;;  %v346_v1 = vld [vmem:[%s1329_s29 + $0x30] sm:$0xff] (!%p293_p7) }
  0x3b   : > { %v352_v8 = vld [vmem:[%s1329_s29 + $0x60] sm:$0xff] (!%p293_p7)  ;;  %v353_v13 = vld [vmem:[%s1329_s29 + $0x68] sm:$0xff] (!%p293_p7)  ;;  %v343_v2 = vld [vmem:[%s1329_s29 + $0x18] sm:$0xff] (!%p293_p7) }
  0x3c   : > { %v1030_v11 = vcombine.high (!%p293_p7), %v348_v7, %v352_v8  ;;  %v356_v14 = vld [vmem:[%s1329_s29 + $0x80] sm:$0xff] (!%p293_p7)  ;;  %766 = vmatprep.subr.bf16.mxu0 (!%p293_p7), %v1022_v4  ;;  %v1032_v15 = vcombine.high (!%p293_p7), %v349_v12, %v353_v13  ;;  %v357_v17 = vld [vmem:[%s1329_s29 + $0x88] sm:$0xff] (!%p293_p7)  ;;  %807 = vmatprep.subr.bf16.mxu1 (!%p293_p7), %v1024_v9  ;;  %v1029_v19 = vcombine.low (!%p293_p7), %v348_v7, %v352_v8  ;;  %v347_v3 = vld [vmem:[%s1329_s29 + $0x38] sm:$0xff] (!%p293_p7) }
  0x3d   : > { %v360_v16 = vld [vmem:[%s1329_s29 + $0xa0] sm:$0xff]  ;;  %v361_v18 = vld [vmem:[%s1329_s29 + $0xa8] sm:$0xff]  ;;  %767 = vmatpush1.bf16.msra.mxu0 %v1021_v6  ;;  %808 = vmatpush1.bf16.msra.mxu1 %v1023_v10  ;;  %v1031_v20 = vcombine.low %v349_v12, %v353_v13  ;;  %v1026_v6 = vcombine.high %v342_v63, %v346_v1  ;;  %v1028_v7 = vcombine.high %v343_v2, %v347_v3  ;;  %v350_v8 = vld [vmem:[%s1329_s29 + $0x50] sm:$0xff]  ;;  %s1442_s5 = smov (!%p328_p8, %s1018_s5), 15 }
  0x3e   : > { %768 = vmatprep.subr.bf16.mxu0 %v1030_v11  ;;  %v1038_v21 = vcombine.high %v356_v14, %v360_v16  ;;  %809 = vmatprep.subr.bf16.mxu1 %v1032_v15  ;;  %v1040_v22 = vcombine.high %v357_v17, %v361_v18  ;;  %v364_v23 = vld [vmem:[%s1329_s29 + $0xc0] sm:$0xff]  ;;  %v365_v25 = vld [vmem:[%s1329_s29 + $0xc8] sm:$0xff]  ;;  %v1037_v27 = vcombine.low %v356_v14, %v360_v16  ;;  %v354_v9 = vld [vmem:[%s1329_s29 + $0x70] sm:$0xff]  ;;  %s330_s8 = scalar_lea.vmem %s1436_s2, %s1442_s5  ;;  %s1020_s9 = sshll.u32 %s1442_s5, 3 }
  0x3f   : > { %v368_v24 = vld [vmem:[%s1329_s29 + $0xe0] sm:$0xff]  ;;  %v369_v26 = vld [vmem:[%s1329_s29 + $0xe8] sm:$0xff]  ;;  %v1039_v28 = vcombine.low %v357_v17, %v361_v18  ;;  %v351_v10 = vld [vmem:[%s1329_s29 + $0x58] sm:$0xff]  ;;  %v1025_v13 = vcombine.low %v342_v63, %v346_v1  ;;  %v1027_v14 = vcombine.low %v343_v2, %v347_v3  ;;  %v1034_v15 = vcombine.high %v350_v8, %v354_v9  ;;  %s1414_s12 = scalar_lea.vmem %s1437_s3, %s1020_s9 }
  0x40   : > { %v1046_v29 = vcombine.high %v364_v23, %v368_v24  ;;  %v1048_v30 = vcombine.high %v365_v25, %v369_v26  ;;  %v372_v31 = vld [vmem:[%s1329_s29 + $0x100] sm:$0xff]  ;;  %v373_v33 = vld [vmem:[%s1329_s29 + $0x108] sm:$0xff]  ;;  %v1045_v35 = vcombine.low %v364_v23, %v368_v24  ;;  %v1047_v36 = vcombine.low %v365_v25, %v369_v26  ;;  %v355_v11 = vld [vmem:[%s1329_s29 + $0x78] sm:$0xff] }
  0x41   : > { %769 = vmatpush1.bf16.msra.mxu0 %v1029_v19  ;;  %810 = vmatpush1.bf16.msra.mxu1 %v1031_v20  ;;  %v376_v32 = vld [vmem:[%s1329_s29 + $0x120] sm:$0xff]  ;;  %v377_v34 = vld [vmem:[%s1329_s29 + $0x128] sm:$0xff]  ;;  %v1036_v16 = vcombine.high %v351_v10, %v355_v11  ;;  %v358_v17 = vld [vmem:[%s1329_s29 + $0x90] sm:$0xff]  ;;  %v406_v3 = vlaneseq }
  0x42   : > { %770 = vmatprep.subr.bf16.mxu0 %v1038_v21  ;;  %811 = vmatprep.subr.bf16.mxu1 %v1040_v22  ;;  %v1054_v37 = vcombine.high %v372_v31, %v376_v32  ;;  %v1056_v38 = vcombine.high %v373_v33, %v377_v34  ;;  %v380_v39 = vld [vmem:[%s1329_s29 + $0x140] sm:$0xff]  ;;  %v381_v41 = vld [vmem:[%s1329_s29 + $0x148] sm:$0xff]  ;;  %v1053_v43 = vcombine.low %v372_v31, %v376_v32  ;;  %v362_v18 = vld [vmem:[%s1329_s29 + $0xb0] sm:$0xff] }
  0x43   : > { %v384_v40 = vld [vmem:[%s1329_s29 + $0x160] sm:$0xff]  ;;  %v385_v42 = vld [vmem:[%s1329_s29 + $0x168] sm:$0xff]  ;;  %v1055_v44 = vcombine.low %v373_v33, %v377_v34  ;;  %v359_v19 = vld [vmem:[%s1329_s29 + $0x98] sm:$0xff]  ;;  %v1033_v21 = vcombine.low %v350_v8, %v354_v9  ;;  %v1035_v22 = vcombine.low %v351_v10, %v355_v11  ;;  %v1042_v23 = vcombine.high %v358_v17, %v362_v18 }
  0x44   : > { %v1062_v45 = vcombine.high %v380_v39, %v384_v40  ;;  %v1064_v46 = vcombine.high %v381_v41, %v385_v42  ;;  %v388_v47 = vld [vmem:[%s1329_s29 + $0x180] sm:$0xff]  ;;  %v389_v49 = vld [vmem:[%s1329_s29 + $0x188] sm:$0xff]  ;;  %v1061_v51 = vcombine.low %v380_v39, %v384_v40  ;;  %v1063_v52 = vcombine.low %v381_v41, %v385_v42  ;;  %v363_v20 = vld [vmem:[%s1329_s29 + $0xb8] sm:$0xff] }
  0x45   : > { %771 = vmatpush1.bf16.msra.mxu0 %v1037_v27  ;;  %812 = vmatpush1.bf16.msra.mxu1 %v1039_v28  ;;  %v392_v48 = vld [vmem:[%s1329_s29 + $0x1a0] sm:$0xff]  ;;  %v393_v50 = vld [vmem:[%s1329_s29 + $0x1a8] sm:$0xff]  ;;  %v1044_v24 = vcombine.high %v359_v19, %v363_v20  ;;  %v366_v25 = vld [vmem:[%s1329_s29 + $0xd0] sm:$0xff] }
  0x46   : > { %772 = vmatprep.subr.bf16.mxu0 %v1046_v29  ;;  %813 = vmatprep.subr.bf16.mxu1 %v1048_v30  ;;  %v1070_v53 = vcombine.high %v388_v47, %v392_v48  ;;  %v1072_v54 = vcombine.high %v389_v49, %v393_v50  ;;  %v396_v55 = vld [vmem:[%s1329_s29 + $0x1c0] sm:$0xff]  ;;  %v397_v57 = vld [vmem:[%s1329_s29 + $0x1c8] sm:$0xff]  ;;  %v1069_v59 = vcombine.low %v388_v47, %v392_v48  ;;  %v370_v26 = vld [vmem:[%s1329_s29 + $0xf0] sm:$0xff] }
  0x47   : > { %v400_v56 = vld [vmem:[%s1329_s29 + $0x1e0] sm:$0xff]  ;;  %v401_v58 = vld [vmem:[%s1329_s29 + $0x1e8] sm:$0xff]  ;;  %v1071_v60 = vcombine.low %v389_v49, %v393_v50  ;;  %v367_v27 = vld [vmem:[%s1329_s29 + $0xd8] sm:$0xff]  ;;  %v1041_v29 = vcombine.low %v358_v17, %v362_v18  ;;  %v1043_v30 = vcombine.low %v359_v19, %v363_v20  ;;  %v1050_v31 = vcombine.high %v366_v25, %v370_v26 }
  0x48   : > { %v1078_v61 = vcombine.high %v396_v55, %v400_v56  ;;  %v1080_v62 = vcombine.high %v397_v57, %v401_v58  ;;  %v1077_v4 = vcombine.low %v396_v55, %v400_v56  ;;  %v1079_v5 = vcombine.low %v397_v57, %v401_v58  ;;  %v1374_v12 = vld [vmem:[%s1434_s0] sm:$0xf]  ;;  %v371_v28 = vld [vmem:[%s1329_s29 + $0xf8] sm:$0xff]  ;;  %v374_v33 = vld [vmem:[%s1329_s29 + $0x110] sm:$0xff] }
  0x49   : > { %773 = vmatpush1.bf16.msra.mxu0 %v1045_v35  ;;  %814 = vmatpush1.bf16.msra.mxu1 %v1047_v36  ;;  %v1052_v32 = vcombine.high %v367_v27, %v371_v28  ;;  %v378_v34 = vld [vmem:[%s1329_s29 + $0x130] sm:$0xff]  ;;  %v375_v35 = vld [vmem:[%s1329_s29 + $0x118] sm:$0xff] }
  0x4a   : > { %774 = vmatprep.subr.bf16.mxu0 %v1054_v37  ;;  %815 = vmatprep.subr.bf16.mxu1 %v1056_v38  ;;  %v379_v36 = vld [vmem:[%s1329_s29 + $0x138] sm:$0xff]  ;;  %v1049_v37 = vcombine.low %v366_v25, %v370_v26  ;;  %v1058_v38 = vcombine.high %v374_v33, %v378_v34  ;;  %v382_v40 = vld [vmem:[%s1329_s29 + $0x150] sm:$0xff] }
  0x4b   : > { %v1060_v39 = vcombine.high %v375_v35, %v379_v36  ;;  %v386_v41 = vld [vmem:[%s1329_s29 + $0x170] sm:$0xff]  ;;  %v383_v42 = vld [vmem:[%s1329_s29 + $0x158] sm:$0xff] }
  0x4c   : > { %v390_v48 = vld [vmem:[%s1329_s29 + $0x190] sm:$0xff]  ;;  %v391_v50 = vld [vmem:[%s1329_s29 + $0x198] sm:$0xff] }
  0x4d   : > { %775 = vmatpush1.bf16.msra.mxu0 %v1053_v43  ;;  %816 = vmatpush1.bf16.msra.mxu1 %v1055_v44  ;;  %v387_v43 = vld [vmem:[%s1329_s29 + $0x178] sm:$0xff]  ;;  %v1057_v44 = vcombine.low %v374_v33, %v378_v34  ;;  %v394_v49 = vld [vmem:[%s1329_s29 + $0x1b0] sm:$0xff] }
  0x4e   : > { %776 = vmatprep.subr.bf16.mxu0 %v1062_v45  ;;  %817 = vmatprep.subr.bf16.mxu1 %v1064_v46  ;;  %v1059_v45 = vcombine.low %v375_v35, %v379_v36  ;;  %v1066_v46 = vcombine.high %v382_v40, %v386_v41  ;;  %v1068_v47 = vcombine.high %v383_v42, %v387_v43  ;;  %v398_v56 = vld [vmem:[%s1329_s29 + $0x1d0] sm:$0xff]  ;;  %v399_v58 = vld [vmem:[%s1329_s29 + $0x1d8] sm:$0xff] }
  0x4f   : > { %v402_v57 = vld [vmem:[%s1329_s29 + $0x1f0] sm:$0xff] }
  0x50   : > { %v1081_v1 = vcombine.low %v398_v56, %v402_v57 }
  0x51   : > { %777 = vmatpush1.bf16.msra.mxu0 %v1061_v51  ;;  %818 = vmatpush1.bf16.msra.mxu1 %v1063_v52  ;;  %v395_v51 = vld [vmem:[%s1329_s29 + $0x1b8] sm:$0xff]  ;;  %v1065_v52 = vcombine.low %v382_v40, %v386_v41 }
  0x52   : > { %778 = vmatprep.subr.bf16.mxu0 %v1070_v53  ;;  %819 = vmatprep.subr.bf16.mxu1 %v1072_v54  ;;  %v1067_v53 = vcombine.low %v383_v42, %v387_v43  ;;  %v1074_v54 = vcombine.high %v390_v48, %v394_v49  ;;  %v1076_v55 = vcombine.high %v391_v50, %v395_v51 }
  0x55   : > { %779 = vmatpush1.bf16.msra.mxu0 %v1069_v59  ;;  %820 = vmatpush1.bf16.msra.mxu1 %v1071_v60  ;;  %v403_v59 = vld [vmem:[%s1329_s29 + $0x1f8] sm:$0xff]  ;;  %v1073_v60 = vcombine.low %v390_v48, %v394_v49 }
  0x56   : > { %780 = vmatprep.subr.bf16.mxu0 %v1078_v61  ;;  %821 = vmatprep.subr.bf16.mxu1 %v1080_v62  ;;  %v1075_v61 = vcombine.low %v391_v50, %v395_v51  ;;  %v1082_v62 = vcombine.high %v398_v56, %v402_v57  ;;  %v1084_v63 = vcombine.high %v399_v58, %v403_v59 }
  0x57   : > { %v1083_v2 = vcombine.low %v399_v58, %v403_v59 }
  0x59   : > { %781 = vmatpush1.bf16.msra.mxu0 %v1077_v4  ;;  %822 = vmatpush1.bf16.msra.mxu1 %v1079_v5  ;;  %v407_v4 = vshrl.u32 %v406_v3, 7 }
  0x5a   : > { %848 = vmatprep.subr.bf16.mxu0 %v1026_v6  ;;  %889 = vmatprep.subr.bf16.mxu1 %v1028_v7  ;;  %v404_v6 = vld [vmem:[%s330_s8] sm:$0xff] }
  0x5b   : > { %v408_v5 = vsub.s32 0, %v407_v4  ;;  %v416_v7 = vsub.s32 2, %v407_v4  ;;  %v412_v8 = vsub.s32 1, %v407_v4  ;;  %v420_v9 = vsub.s32 3, %v407_v4 }
  0x5c   : > { %799 = vmatmul.mubr.bf16.vlgmr.msra.gmra.mrb[0].mxu0 %v1374_v12  ;;  %840 = vmatmul.mubr.bf16.vlgmr.msra.gmra.mrb[0].mxu1 %v1374_v12  ;;  %v424_v26 = vsub.s32 4, %v407_v4 }
  0x5d   : > { %849 = vmatpush1.bf16.msra.mxu0 %v1025_v13  ;;  %890 = vmatpush1.bf16.msra.mxu1 %v1027_v14  ;;  %v409_v10 = vrot.slane %v404_v6, %v408_v5  ;;  %v417_v11 = vrot.slane %v404_v6, %v416_v7  ;;  %v413_v13 = vrot.slane %v404_v6, %v412_v8 }
  0x5e   : > { %850 = vmatprep.subr.bf16.mxu0 %v1034_v15  ;;  %891 = vmatprep.subr.bf16.mxu1 %v1036_v16 }
  0x5f   : > { %880 = vmatprep.mubr.bf16.mxu0 %v1137_v0  ;;  %921 = vmatprep.mubr.bf16.mxu1 %v1137_v0  ;;  %v1051_v0 = vcombine.low %v367_v27, %v371_v28  ;;  %v432_v27 = vsub.s32 6, %v407_v4  ;;  %v428_v28 = vsub.s32 5, %v407_v4 }
  0x61   : > { %851 = vmatpush1.bf16.msra.mxu0 %v1033_v21  ;;  %892 = vmatpush1.bf16.msra.mxu1 %v1035_v22 }
  0x62   : > { %852 = vmatprep.subr.bf16.mxu0 %v1042_v23  ;;  %893 = vmatprep.subr.bf16.mxu1 %v1044_v24 }
  0x65   : > { %853 = vmatpush1.bf16.msra.mxu0 %v1041_v29  ;;  %894 = vmatpush1.bf16.msra.mxu1 %v1043_v30  ;;  %v436_v29 = vsub.s32 7, %v407_v4  ;;  %v425_v30 = vrot.slane %v404_v6, %v424_v26 }
  0x66   : > { %854 = vmatprep.subr.bf16.mxu0 %v1050_v31  ;;  %895 = vmatprep.subr.bf16.mxu1 %v1052_v32  ;;  %v433_v31 = vrot.slane %v404_v6, %v432_v27  ;;  %v429_v32 = vrot.slane %v404_v6, %v428_v28 }
  0x67   : > { %v437_v33 = vrot.slane %v404_v6, %v436_v29 }
  0x69   : > { %855 = vmatpush1.bf16.msra.mxu0 %v1049_v37  ;;  %896 = vmatpush1.bf16.msra.mxu1 %v1051_v0 }
  0x6a   : > { %856 = vmatprep.subr.bf16.mxu0 %v1058_v38  ;;  %897 = vmatprep.subr.bf16.mxu1 %v1060_v39 }
  0x6d   : > { %857 = vmatpush1.bf16.msra.mxu0 %v1057_v44  ;;  %898 = vmatpush1.bf16.msra.mxu1 %v1059_v45 }
  0x6e   : > { %858 = vmatprep.subr.bf16.mxu0 %v1066_v46  ;;  %899 = vmatprep.subr.bf16.mxu1 %v1068_v47 }
  0x71   : > { %859 = vmatpush1.bf16.msra.mxu0 %v1065_v52  ;;  %900 = vmatpush1.bf16.msra.mxu1 %v1067_v53 }
  0x72   : > { %860 = vmatprep.subr.bf16.mxu0 %v1074_v54  ;;  %901 = vmatprep.subr.bf16.mxu1 %v1076_v55 }
  0x75   : > { %861 = vmatpush1.bf16.msra.mxu0 %v1073_v60  ;;  %902 = vmatpush1.bf16.msra.mxu1 %v1075_v61 }
  0x76   : > { %862 = vmatprep.subr.bf16.mxu0 %v1082_v62  ;;  %903 = vmatprep.subr.bf16.mxu1 %v1084_v63 }
  0x79   : > { %863 = vmatpush1.bf16.msra.mxu0 %v1081_v1  ;;  %904 = vmatpush1.bf16.msra.mxu1 %v1083_v2 }
  0x7c   : > { %881 = vmatmul.mubr.bf16.vlgmr.msra.gmra.mrb[4].mxu0 %v1374_v12  ;;  %922 = vmatmul.mubr.bf16.vlgmr.msra.gmra.mrb[4].mxu1 %v1374_v12  ;;  %v421_v12 = vrot.slane %v404_v6, %v420_v9 }
 0x12f   : > { %v800_v14 = vpop.f32.mrb[0].mxu0  ;;  %v841_v16 = vpop.f32.mrb[0].mxu1 }
 0x130   : > { %v801_v15 = vadd.f32 %v800_v14, %v409_v10  ;;  %v802_v17 = vpop.f32.mrb[1].mxu0  ;;  %v842_v18 = vadd.f32 %v841_v16, %v417_v11  ;;  %v843_v20 = vpop.f32.mrb[1].mxu1 }
 0x131   : > { %v803_v19 = vadd.f32 %v802_v17, %v413_v13  ;;  %v804_v21 = vpop.f32.mrb[2].mxu0  ;;  %v844_v22 = vadd.f32 %v843_v20, %v421_v12  ;;  %v845_v23 = vpop.f32.mrb[2].mxu1 }
 0x132   : > { %930 = vst [vmem:[%s1414_s12] sm:$0xff] %v801_v15  ;;  %v805_v24 = vpop.f32.mrb[3].mxu0  ;;  %932 = vst [vmem:[%s1414_s12 + $0x10] sm:$0xff] %v842_v18  ;;  %v846_v25 = vpop.f32.mrb[3].mxu1 }
 0x133   : > { %931 = vst [vmem:[%s1414_s12 + $0x8] sm:$0xff] %v803_v19  ;;  %933 = vst [vmem:[%s1414_s12 + $0x18] sm:$0xff] %v844_v22 }
 0x14f   : > { %v882_v34 = vpop.f32.mrb[4].mxu0  ;;  %v923_v36 = vpop.f32.mrb[4].mxu1 }
 0x150   : > { %v883_v35 = vadd.f32 %v882_v34, %v425_v30  ;;  %v884_v37 = vpop.f32.mrb[5].mxu0  ;;  %v924_v0 = vadd.f32 %v923_v36, %v433_v31  ;;  %v925_v39 = vpop.f32.mrb[5].mxu1 }
 0x151   : > { %v885_v38 = vadd.f32 %v884_v37, %v429_v32  ;;  %v886_v40 = vpop.f32.mrb[6].mxu0  ;;  %v926_v41 = vadd.f32 %v925_v39, %v437_v33  ;;  %v927_v42 = vpop.f32.mrb[6].mxu1 }
 0x152   : > { %934 = vst [vmem:[%s1414_s12 + $0x20] sm:$0xff] %v883_v35  ;;  %v887_v43 = vpop.f32.mrb[7].mxu0  ;;  %936 = vst [vmem:[%s1414_s12 + $0x30] sm:$0xff] %v924_v0  ;;  %v928_v44 = vpop.f32.mrb[7].mxu1 }
 0x153   : > { %935 = vst [vmem:[%s1414_s12 + $0x28] sm:$0xff] %v885_v38  ;;  %937 = vst [vmem:[%s1414_s12 + $0x38] sm:$0xff] %v926_v41 }
 0x154 PF: > { %p10_p9 = scmp.ge.s32.totalorder %s1175_s16, 4   ;;  %s1438_s12 = smov %s1131_s13 }
 0x155   : > { %s1439_s13 = smov %s1184_s19  ;;  %s1440_s14 = smov %s1175_s16 }
 0x156   :  { %12 = sbr.rel (!%p10_p9) target bundleno = 2 (0x2), region = 93 }

// kernel: decoder_forward.2
= control target key start
LH: loop header
LB: loop body
LE: loop exit
PB: predicated region body
PF: predicated region fallthrough
CT: control target
= control target key end

     0   :  { %19 = vsyncpa [#allocation3], 0  ;;  %s2893_s25 = smov [#allocation2]   ;;  %s3638_s0 = inlined_call_operand.vmem [shape: bf16[8,16,128], index: 0, kind: input, shape index: {}]   ;;  %s3639_s1 = inlined_call_operand.vmem [shape: bf16[8,64], index: 1, kind: input, shape index: {}]   ;;  %s3640_s2 = inlined_call_operand.vmem [shape: bf16[8,64], index: 2, kind: input, shape index: {}]   ;;  %s3641_s3 = inlined_call_operand.vmem [shape: bf16[64,64], index: 3, kind: input, shape index: {}]   ;;  %s3642_s4 = inlined_call_operand.vmem [shape: bf16[128,64], index: 4, kind: input, shape index: {}]   ;;  %s3643_s5 = inlined_call_operand.vmem [shape: f32[1,64], index: 5, kind: input, shape index: {}]   ;;  %s3644_s6 = inlined_call_operand.vmem [shape: f32[1,64], index: 6, kind: input, shape index: {}]   ;;  %s3645_s7 = inlined_call_operand.vmem [shape: bf16[64,384], index: 7, kind: input, shape index: {}]   ;;  %s3646_s8 = inlined_call_operand.vmem [shape: bf16[128,384], index: 8, kind: input, shape index: {}]   ;;  %s3647_s9 = inlined_call_operand.vmem [shape: bf16[64,384], index: 9, kind: input, shape index: {}]   ;;  %s3648_s10 = inlined_call_operand.hbm [shape: f32[1,384], index: 10, kind: input, shape index: {}]   ;;  %s3649_s11 = inlined_call_operand.vmem [shape: f32[8,128], index: 11, kind: output, shape index: {0}]   ;;  %s3650_s12 = inlined_call_operand.vmem [shape: f32[8,128], index: 12, kind: output, shape index: {1}]   ;;  %s3651_s13 = inlined_call_operand.vmem [shape: bf16[8,128], index: 13, kind: output, shape index: {2}]  }
   0x1   :  { %s46_s26 = sshll.u32 %s2893_s25, 4  ;;  %s2869_s29 = scalar_lea.hbm %s3648_s10, 48  ;;  %s47_s26 = int_to_ptr.vmem [resolvable:$true] %s46_s26 }
   0x2   :  { %p2870_p0 = scmp.ne.s32.totalorder %s3648_s10, %s2869_s29  ;;  %p2873_p1 = scmp.lt.u32.totalorder %s2869_s29, %s3648_s10 }
   0x4   :  { %p2875_p2 = pnand %p2873_p1, %p2870_p0 }
   0x6   :  { %2878 = shalt.err (!%p2875_p2)
}
   0x7   :  { %s2879_s17 = scalar_lea.vmem %s47_s26, 48  ;;  %s2883_s18 = scalar_lea.vmem %s47_s26, 64 }
   0x8   :  { %p2880_p3 = scmp.ne.s32.totalorder %s47_s26, %s2879_s17  ;;  %p2884_p4 = scmp.lt.s32.totalorder %s47_s26, %s47_s26 }
   0x9   :  { %p2885_p5 = scmp.lt.s32.totalorder %s2883_s18, %s2879_s17 }
   0xb   :  { %p2886_p6 = por %p2885_p5, %p2884_p4 }
   0xd   :  { %p2887_p7 = pnand %p2886_p6, %p2880_p3 }
   0xf   :  { %2890 = shalt.err (!%p2887_p7)
}
  0x10   :  { %49 = dma.hbm_to_vmem [thread:$0]  %s3648_s10, 48, %s47_s26, [#allocation3]  }
  0x11   :  { %2891 = dma.done.wait [#allocation3], 48  }
  0x12   :  { %2892 = vsyncadd [#allocation3], 4294967248  ;;  %v2894_v0 = vmov 0.0   ;;  %vm2895_vm0 = vmmov 0   ;;  %v2692_v1 = vld [vmem:[%s3642_s4] sm:$0xff]   ;;  %v2693_v2 = vld [vmem:[%s3642_s4 + $0x8] sm:$0xff]   ;;  %v368_v24 = vlaneseq }
  0x13   :  { %2508 = vmatprep.subr.bf16.mxu0 %v2894_v0  ;;  %2516 = vmatprep.mubr.msk.bf16.mxu0 %vm2895_vm0, %v2894_v0  ;;  %v2694_v3 = vld [vmem:[%s3641_s3] sm:$0xff]   ;;  %v2695_v4 = vld [vmem:[%s3642_s4 + $0x10] sm:$0xff]   ;;  %v2696_v5 = vld [vmem:[%s3641_s3 + $0x8] sm:$0xff]   ;;  %vm110_vm1 = vcmask 523264   ;;  %v2896_v22 = vmov 1966171168  }
  0x14   :  { %2520 = vmatprep.subr.bf16.mxu1 %v2692_v1  ;;  %2509 = vmatpush3.bf16.msra.mxu0 %v2694_v3  ;;  %v2697_v6 = vld [vmem:[%s3642_s4 + $0x18] sm:$0xff]   ;;  %v2698_v7 = vld [vmem:[%s3641_s3 + $0x10] sm:$0xff]   ;;  %v2699_v8 = vld [vmem:[%s3642_s4 + $0x20] sm:$0xff]   ;;  %v366_v23 = vunpack.c.l.s4 %v2896_v22  ;;  %v3078_v26 = vshrl.u32 %v368_v24, 7  ;;  %vm583_vm2 = vcmask 130112   ;;  %vm648_vm3 = vcmask 1041409  }
  0x15   :  { %2521 = vmatpush3.bf16.msra.mxu1 %v2692_v1  ;;  %2510 = vmatprep.subr.bf16.mxu0 %v2894_v0  ;;  %v2700_v9 = vld [vmem:[%s3641_s3 + $0x18] sm:$0xff]   ;;  %v3017_v10 = vld [vmem:[%s3638_s0] sm:$0xff]   ;;  %v2701_v11 = vld [vmem:[%s3642_s4 + $0x28] sm:$0xff]   ;;  %vm650_vm4 = vcmask 1042434   ;;  %vm652_vm5 = vcmask 1043459   ;;  %vm654_vm6 = vcmask 1044484  }
  0x16   :  { %2522 = vmatprep.subr.bf16.mxu1 %v2693_v2  ;;  %2536 = vmatprep.mubr.bf16.mxu1 %v3017_v10  ;;  %v70_v12 = vld [vmem:[%s3639_s1] sm:$0xf]  ;;  %v2702_v13 = vld [vmem:[%s3642_s4 + $0x30] sm:$0xff]   ;;  %v2703_v14 = vld [vmem:[%s3642_s4 + $0x38] sm:$0xff]   ;;  %v367_v25 = vunpack.c.0.s8 %v366_v23  ;;  %v3085_v37 = vsub.s32 0, %v3078_v26  ;;  %vm656_vm7 = vcmask 1045509  }
  0x17   :  { %v3038_v15 = vld [vmem:[%s3638_s0 + $0x8] sm:$0xff]   ;;  %v3043_v16 = vld [vmem:[%s3638_s0 + $0x10] sm:$0xff]   ;;  %v3050_v17 = vld [vmem:[%s3638_s0 + $0x18] sm:$0xff]   ;;  %vm658_vm8 = vcmask 1046534   ;;  %vm660_vm9 = vcmask 1047559   ;;  %vm663_vm10 = vcmask 130048  }
  0x18   :  { %2511 = vmatpush3.bf16.msra.mxu0 %v2696_v5  ;;  %v3055_v18 = vld [vmem:[%s3638_s0 + $0x20] sm:$0xff]   ;;  %v3062_v19 = vld [vmem:[%s3638_s0 + $0x28] sm:$0xff]   ;;  %v3067_v20 = vld [vmem:[%s3638_s0 + $0x30] sm:$0xff]   ;;  %v370_v28 = vsub.s32 %v367_v25, %v3078_v26 }
  0x19   :  { %2523 = vmatpush3.bf16.msra.mxu1 %v2693_v2  ;;  %2512 = vmatprep.subr.bf16.mxu0 %v2894_v0  ;;  %v3074_v21 = vld [vmem:[%s3638_s0 + $0x38] sm:$0xff]   ;;  %v2359_v27 = vld [vmem:[%s3643_s5] ss:$0 sm:$0xff] }
  0x1a   :  { %2524 = vmatprep.subr.bf16.mxu1 %v2695_v4  ;;  %v3094_v1 = vld [vmem:[%s3644_s6] ss:$0 sm:$0xff] }
  0x1c   :  { %2513 = vmatpush3.bf16.msra.mxu0 %v2698_v7 }
  0x1d   :  { %2525 = vmatpush3.bf16.msra.mxu1 %v2695_v4  ;;  %2514 = vmatprep.subr.bf16.mxu0 %v2894_v0 }
  0x1e   :  { %2526 = vmatprep.subr.bf16.mxu1 %v2697_v6 }
  0x20   :  { %2515 = vmatpush3.bf16.msra.mxu0 %v2700_v9 }
  0x21   :  { %2527 = vmatpush3.bf16.msra.mxu1 %v2697_v6 }
  0x22   :  { %2528 = vmatprep.subr.bf16.mxu1 %v2699_v8 }
  0x23   :  { %2517 = vmatmul.mubr.msk.bf16.vlgmr.msra.gmra.mrb[0].mxu0 %vm110_vm1, %v70_v12 }
  0x24   :  { %2556 = vmatprep.mubr.msk.f32.mxu0 %vm2895_vm0, %v2894_v0 }
  0x25   :  { %2529 = vmatpush3.bf16.msra.mxu1 %v2699_v8 }
  0x26   :  { %2530 = vmatprep.subr.bf16.mxu1 %v2701_v11 }
  0x29   :  { %2531 = vmatpush3.bf16.msra.mxu1 %v2701_v11 }
  0x2a   :  { %2532 = vmatprep.subr.bf16.mxu1 %v2702_v13 }
  0x2d   :  { %2533 = vmatpush3.bf16.msra.mxu1 %v2702_v13 }
  0x2e   :  { %2534 = vmatprep.subr.bf16.mxu1 %v2703_v14 }
  0x31   :  { %2535 = vmatpush3.bf16.msra.mxu1 %v2703_v14 }
  0x34   :  { %2537 = vmatmul.mubr.bf16.vlgmr.msra.gmra.mrb[0].mxu1 %v3038_v15 }
  0x35   :  { %2540 = vmatprep.mubr.bf16.mxu1 %v3043_v16 }
  0x3c   :  { %2541 = vmatmul.mubr.bf16.gmra.mrb[4].mxu1 %v3050_v17 }
  0x3d   :  { %2544 = vmatprep.mubr.bf16.mxu1 %v3055_v18 }
  0x44   :  { %2545 = vmatmul.mubr.bf16.gmra.mrb[8].mxu1 %v3062_v19 }
  0x45   :  { %2548 = vmatprep.mubr.bf16.mxu1 %v3067_v20 }
  0x4c   :  { %2549 = vmatmul.mubr.bf16.gmra.mrb[12].mxu1 %v3074_v21 }
  0xf6   :  { %v148_v29 = vpop.f32.mrb[0].mxu0 }
  0xf7   :  { %v149_v30 = vadd.f32 %v2359_v27, %v148_v29  ;;  %v2518_v31 = vpop.f32.mrb[1].mxu0 }
  0xf8   :  { %v151_v32 = vpop.f32.mrb[2].mxu0 }
  0xf9   :  { %v371_v33 = vrot.slane %v149_v30, %v370_v28  ;;  %v2519_v34 = vpop.f32.mrb[3].mxu0  ;;  %v364_v41 = vcombine.high %v149_v30, %v149_v30 }
  0xfb   :  { %v379_v35 = vcombine.high %v371_v33, %v371_v33  ;;  %v387_v38 = vrot.slane %v371_v33, %v370_v28  ;;  %v378_v47 = vrot.slane %v364_v41, %v370_v28 }
  0xfd   :  { %v401_v36 = vrot.slane %v379_v35, %v370_v28  ;;  %v416_v40 = vrot.slane %v387_v38, %v3085_v37  ;;  %v409_v52 = vcombine.high %v387_v38, %v387_v38  ;;  %v380_v54 = vcombine.high %v378_v47, %v378_v47 }
  0xfe   :  { %v394_v3 = vrot.slane %v378_v47, %v370_v28 }
  0xff   :  { %v420_v39 = vrot.slane %v401_v36, %v3085_v37  ;;  %v411_v50 = vcombine.high %v401_v36, %v401_v36  ;;  %v424_v56 = vrot.slane %v409_v52, %v3085_v37  ;;  %v408_v63 = vrot.slane %v380_v54, %v370_v28 }
 0x100   :  { %v432_v14 = vrot.slane %v394_v3, %v3085_v37  ;;  %v410_v36 = vcombine.high %v394_v3, %v394_v3 }
 0x101   :  { %v428_v53 = vrot.slane %v411_v50, %v3085_v37  ;;  %v436_v8 = vrot.slane %v408_v63, %v3085_v37  ;;  %v412_v33 = vcombine.high %v408_v63, %v408_v63 }
 0x107   :  { %v2538_v42 = vpop.f32.mrb[0].mxu1 }
 0x108   :  { %v455_v43 = vadd.f32 %v2538_v42, %v420_v39  ;;  %v300_v44 = vpop.f32.mrb[1].mxu1 }
 0x109   :  { %v453_v45 = vadd.f32 %v416_v40, %v300_v44  ;;  %v2539_v46 = vpop.f32.mrb[2].mxu1 }
 0x10a   :  { %2776 = vtanh.f32 %v455_v43  ;;  %v456_v48 = vadd.f32 %v2539_v46, %v420_v39  ;;  %v303_v49 = vpop.f32.mrb[3].mxu1  ;;  %v444_v43 = vrot.slane %v412_v33, %v3085_v37  ;;  %v440_v46 = vrot.slane %v410_v36, %v3085_v37 }
 0x10b   :  { %2778 = vtanh.f32 %v453_v45  ;;  %v454_v51 = vadd.f32 %v416_v40, %v303_v49 }
 0x10c   :  { %2780 = vtanh.f32 %v456_v48 }
 0x10d   :  { %2782 = vtanh.f32 %v454_v51 }
 0x10f   :  { %v2542_v55 = vpop.f32.mrb[4].mxu1 }
 0x110   :  { %v459_v57 = vadd.f32 %v2542_v55, %v428_v53  ;;  %v316_v58 = vpop.f32.mrb[5].mxu1 }
 0x111   :  { %v457_v59 = vadd.f32 %v424_v56, %v316_v58  ;;  %v2543_v60 = vpop.f32.mrb[6].mxu1 }
 0x112   :  { %2784 = vtanh.f32 %v459_v57  ;;  %v460_v61 = vadd.f32 %v2543_v60, %v428_v53  ;;  %v319_v62 = vpop.f32.mrb[7].mxu1 }
 0x113   :  { %2786 = vtanh.f32 %v457_v59  ;;  %v458_v2 = vadd.f32 %v424_v56, %v319_v62 }
 0x114   :  { %v2777_v4 = vpop.eup %2776  ;;  %2788 = vtanh.f32 %v460_v61 }
 0x115   :  { %v2779_v5 = vpop.eup %2778  ;;  %2790 = vtanh.f32 %v458_v2  ;;  %v494_v6 = vmul.f32 %v2777_v4, %v3094_v1 }
 0x116   :  { %v2781_v7 = vpop.eup %2780  ;;  %v492_v9 = vmul.f32 %v2779_v5, %v3094_v1 }
 0x117   :  { %v2783_v11 = vpop.eup %2782  ;;  %v2546_v12 = vpop.f32.mrb[8].mxu1  ;;  %v514_v13 = vsel %vm110_vm1, %v494_v6, 0.0  ;;  %v495_v22 = vmul.f32 %v2781_v7, %v3094_v1 }
 0x118   :  { %v463_v23 = vadd.f32 %v2546_v12, %v436_v8  ;;  %515 = vadd.xlane.f32.xlu1 %v514_v13  ;;  %v332_v25 = vpop.f32.mrb[9].mxu1  ;;  %v508_v27 = vsel %vm110_vm1, %v492_v9, 0.0  ;;  %v493_v28 = vmul.f32 %v2783_v11, %v3094_v1 }
 0x119   :  { %v461_v29 = vadd.f32 %v432_v14, %v332_v25  ;;  %509 = vadd.xlane.f32.xlu0 %v508_v27  ;;  %v2547_v30 = vpop.f32.mrb[10].mxu1  ;;  %v517_v35 = vsel %vm110_vm1, %v495_v22, 0.0 }
 0x11a   :  { %2792 = vtanh.f32 %v463_v23  ;;  %v464_v31 = vadd.f32 %v2547_v30, %v436_v8  ;;  %v335_v32 = vpop.f32.mrb[11].mxu1  ;;  %v511_v39 = vsel %vm110_vm1, %v493_v28, 0.0 }
 0x11b   :  { %2794 = vtanh.f32 %v461_v29  ;;  %v462_v34 = vadd.f32 %v432_v14, %v335_v32 }
 0x11c   :  { %v2785_v38 = vpop.eup %2784  ;;  %2796 = vtanh.f32 %v464_v31  ;;  %518 = vadd.xlane.f32.xlu1 %v517_v35 }
 0x11d   :  { %v2787_v40 = vpop.eup %2786  ;;  %2798 = vtanh.f32 %v462_v34  ;;  %512 = vadd.xlane.f32.xlu0 %v511_v39  ;;  %v498_v41 = vmul.f32 %v2785_v38, %v3094_v1  ;;  %v573_v38 = vand.u32 127, %v368_v24 }
 0x11e   :  { %v2789_v42 = vpop.eup %2788  ;;  %v496_v51 = vmul.f32 %v2787_v40, %v3094_v1 }
 0x11f   :  { %v2791_v44 = vpop.eup %2790  ;;  %v2550_v45 = vpop.f32.mrb[12].mxu1  ;;  %v526_v47 = vsel %vm110_vm1, %v498_v41, 0.0  ;;  %v499_v48 = vmul.f32 %v2789_v42, %v3094_v1 }
 0x120   :  { %v467_v49 = vadd.f32 %v2550_v45, %v444_v43  ;;  %v348_v50 = vpop.f32.mrb[13].mxu1  ;;  %v497_v55 = vmul.f32 %v2791_v44, %v3094_v1  ;;  %v520_v60 = vsel %vm110_vm1, %v496_v51, 0.0  ;;  %v3153_v44 = vsub.s32 %v573_v38, %v3078_v26 }
 0x121   :  { %v465_v52 = vadd.f32 %v440_v46, %v348_v50  ;;  %527 = vadd.xlane.f32.xlu0 %v526_v47  ;;  %v2551_v53 = vpop.f32.mrb[14].mxu1  ;;  %v529_v54 = vsel %vm110_vm1, %v499_v48, 0.0 }
 0x122   :  { %2800 = vtanh.f32 %v467_v49  ;;  %v468_v56 = vadd.f32 %v2551_v53, %v444_v43  ;;  %530 = vadd.xlane.f32.xlu1 %v529_v54  ;;  %v351_v57 = vpop.f32.mrb[15].mxu1  ;;  %v523_v62 = vsel %vm110_vm1, %v497_v55, 0.0 }
 0x123   :  { %2802 = vtanh.f32 %v465_v52  ;;  %v466_v58 = vadd.f32 %v440_v46, %v351_v57 }
 0x124   :  { %v2793_v59 = vpop.eup %2792  ;;  %2804 = vtanh.f32 %v468_v56 }
 0x125   :  { %v2795_v61 = vpop.eup %2794  ;;  %2806 = vtanh.f32 %v466_v58  ;;  %521 = vadd.xlane.f32.xlu0 %v520_v60  ;;  %v502_v63 = vmul.f32 %v2793_v59, %v3094_v1 }
 0x126   :  { %v2797_v2 = vpop.eup %2796  ;;  %524 = vadd.xlane.f32.xlu1 %v523_v62  ;;  %v500_v6 = vmul.f32 %v2795_v61, %v3094_v1 }
 0x127   :  { %v2799_v3 = vpop.eup %2798  ;;  %v538_v4 = vsel %vm110_vm1, %v502_v63, 0.0  ;;  %v503_v5 = vmul.f32 %v2797_v2, %v3094_v1 }
 0x128   :  { %v501_v8 = vmul.f32 %v2799_v3, %v3094_v1  ;;  %v532_v11 = vsel %vm110_vm1, %v500_v6, 0.0 }
 0x129   :  { %539 = vadd.xlane.f32.xlu0 %v538_v4  ;;  %v541_v7 = vsel %vm110_vm1, %v503_v5, 0.0 }
 0x12a   :  { %542 = vadd.xlane.f32.xlu1 %v541_v7  ;;  %v535_v13 = vsel %vm110_vm1, %v501_v8, 0.0 }
 0x12c   :  { %v2801_v9 = vpop.eup %2800 }
 0x12d   :  { %v2803_v12 = vpop.eup %2802  ;;  %533 = vadd.xlane.f32.xlu0 %v532_v11  ;;  %v506_v28 = vmul.f32 %v2801_v9, %v3094_v1 }
 0x12e   :  { %v2805_v14 = vpop.eup %2804  ;;  %536 = vadd.xlane.f32.xlu1 %v535_v13  ;;  %v504_v22 = vmul.f32 %v2803_v12, %v3094_v1 }
 0x12f   :  { %v2807_v23 = vpop.eup %2806  ;;  %v507_v30 = vmul.f32 %v2805_v14, %v3094_v1  ;;  %v550_v31 = vsel %vm110_vm1, %v506_v28, 0.0 }
 0x130   :  { %v544_v25 = vsel %vm110_vm1, %v504_v22, 0.0  ;;  %v505_v27 = vmul.f32 %v2807_v23, %v3094_v1  ;;  %v578_v1 = vadd.s32 4294967288, %v573_v38  ;;  %v3223_v38 = vsub.s32 1, %v3078_v26 }
 0x131   :  { %545 = vadd.xlane.f32.xlu0 %v544_v25  ;;  %v553_v32 = vsel %vm110_vm1, %v507_v30, 0.0 }
 0x132   :  { %v547_v29 = vsel %vm110_vm1, %v505_v27, 0.0  ;;  %v3148_v42 = vsub.s32 %v578_v1, %v3078_v26 }
 0x133   :  { %548 = vadd.xlane.f32.xlu1 %v547_v29 }
 0x135   :  { %551 = vadd.xlane.f32.xlu0 %v550_v31 }
 0x137   :  { %554 = vadd.xlane.f32.xlu1 %v553_v32  ;;  %v2897_v32 = vmov 0  }
 0x138   :  { %2691 = vset.pattern.permute.xlu0 %v2897_v32  ;;  %2690 = vset.pattern.permute.xlu1 %v2897_v32 }
 0x139   :  { %1945 = vmatprep.mubr.bf16.mxu1 %v2897_v32 }
 0x1a5   :  { %v3132_v33 = vpop.xlane.xlu1 %515 }
 0x1a6   :  { %v3134_v34 = vpop.xlane.xlu0 %509  ;;  %v588_v50 = vrot.slane %v3132_v33, %v3153_v44 }
 0x1a7   :  { %v577_v51 = vrot.slane %v3134_v34, %v3153_v44 }
 0x1a9   :  { %v3138_v36 = vpop.xlane.xlu1 %518 }
 0x1aa   :  { %v3136_v35 = vpop.xlane.xlu0 %512  ;;  %v592_v24 = vrot.slane %v3138_v36, %v3148_v42 }
 0x1ab   :  { %v582_v46 = vrot.slane %v3136_v35, %v3148_v42 }
 0x1ac   :  { %v593_v53 = vsel %vm583_vm2, %v592_v24, %v588_v50 }
 0x1ad   :  { %v584_v54 = vsel %vm583_vm2, %v582_v46, %v577_v51  ;;  %v3231_v51 = vsub.s32 2, %v3078_v26 }
 0x1ae   :  { %v3141_v39 = vpop.xlane.xlu0 %527  ;;  %v649_v61 = vsel %vm648_vm3, %v593_v53, %v584_v54  ;;  %v694_v54 = vsub.s32 6, %v3078_v26 }
 0x1af   :  { %v3143_v40 = vpop.xlane.xlu1 %530  ;;  %v606_v59 = vrot.slane %v3141_v39, %v3153_v44 }
 0x1b0   :  { %v610_v60 = vrot.slane %v3143_v40, %v3148_v42 }
 0x1b2   :  { %v3145_v41 = vpop.xlane.xlu0 %521  ;;  %v611_v4 = vsel %vm583_vm2, %v610_v60, %v606_v59 }
 0x1b3   :  { %v3150_v43 = vpop.xlane.xlu1 %524  ;;  %v597_v48 = vrot.slane %v3145_v41, %v3153_v44 }
 0x1b4   :  { %v601_v49 = vrot.slane %v3150_v43, %v3148_v42 }
 0x1b6   :  { %v3155_v45 = vpop.xlane.xlu0 %539  ;;  %v602_v56 = vsel %vm583_vm2, %v601_v49, %v597_v48  ;;  %v690_v48 = vsub.s32 5, %v3078_v26 }
 0x1b7   :  { %v3161_v47 = vpop.xlane.xlu1 %542  ;;  %v651_v63 = vsel %vm650_vm4, %v602_v56, %v649_v61  ;;  %v624_v5 = vrot.slane %v3155_v45, %v3153_v44 }
 0x1b8   :  { %v628_v6 = vrot.slane %v3161_v47, %v3148_v42  ;;  %v653_v11 = vsel %vm652_vm5, %v611_v4, %v651_v63  ;;  %v682_v63 = vsub.s32 3, %v3078_v26 }
 0x1ba   :  { %v3171_v52 = vpop.xlane.xlu0 %533  ;;  %v629_v22 = vsel %vm583_vm2, %v628_v6, %v624_v5 }
 0x1bb   :  { %v3175_v55 = vpop.xlane.xlu1 %536  ;;  %v615_v57 = vrot.slane %v3171_v52, %v3153_v44 }
 0x1bc   :  { %v619_v58 = vrot.slane %v3175_v55, %v3148_v42 }
 0x1be   :  { %v3187_v62 = vpop.xlane.xlu0 %545  ;;  %v620_v2 = vsel %vm583_vm2, %v619_v58, %v615_v57 }
 0x1bf   :  { %v633_v8 = vrot.slane %v3187_v62, %v3153_v44  ;;  %v655_v12 = vsel %vm654_vm6, %v620_v2, %v653_v11 }
 0x1c0   :  { %v3191_v3 = vpop.xlane.xlu1 %548  ;;  %v657_v27 = vsel %vm656_vm7, %v629_v22, %v655_v12 }
 0x1c1   :  { %v637_v7 = vrot.slane %v3191_v3, %v3148_v42 }
 0x1c2   :  { %v3202_v9 = vpop.xlane.xlu0 %551 }
 0x1c3   :  { %v638_v14 = vsel %vm583_vm2, %v637_v7, %v633_v8  ;;  %v642_v23 = vrot.slane %v3202_v9, %v3153_v44 }
 0x1c4   :  { %v3206_v13 = vpop.xlane.xlu1 %554  ;;  %v659_v29 = vsel %vm658_vm8, %v638_v14, %v657_v27 }
 0x1c5   :  { %v646_v25 = vrot.slane %v3206_v13, %v3148_v42 }
 0x1c7   :  { %v647_v28 = vsel %vm583_vm2, %v646_v25, %v642_v23 }
 0x1c8   :  { %v661_v30 = vsel %vm660_vm9, %v647_v28, %v659_v29 }
 0x1c9   :  { %v664_v31 = vsel %vm663_vm10, %v661_v30, -inf }
 0x1ca   :  { %665 = vmax.xlane.f32.xlu0 %v664_v31 }
 0x257   :  { %v666_v1 = vpop.xlane.xlu0 %665 }
 0x258   :  { %v671_v24 = vrot.slane %v666_v1, %v3085_v37  ;;  %v675_v46 = vrot.slane %v666_v1, %v3223_v38  ;;  %v3237_v56 = vrot.slane %v666_v1, %v690_v48  ;;  %v679_v59 = vrot.slane %v666_v1, %v3231_v51 }
 0x259   :  { %v683_v7 = vrot.slane %v666_v1, %v682_v63 }
 0x25a   :  { %v708_v49 = vsub.f32 %v3134_v34, %v671_v24  ;;  %v709_v50 = vsub.f32 %v3136_v35, %v671_v24  ;;  %v710_v53 = vsub.f32 %v3132_v33, %v675_v46  ;;  %v711_v60 = vsub.f32 %v3138_v36, %v675_v46 }
 0x25b   :  { %v698_v35 = vsub.s32 7, %v3078_v26  ;;  %v3244_v33 = vrot.slane %v666_v1, %v694_v54  ;;  %v718_v61 = vsub.f32 %v3155_v45, %v3237_v56  ;;  %v712_v2 = vsub.f32 %v3145_v41, %v679_v59 }
 0x25c   :  { %v724_v57 = vmul.f32 1.442695, %v708_v49  ;;  %v726_v58 = vmul.f32 1.442695, %v709_v50  ;;  %v728_v34 = vmul.f32 1.442695, %v710_v53  ;;  %v713_v8 = vsub.f32 %v3150_v43, %v679_v59 }
 0x25d   :  { %v730_v4 = vmul.f32 1.442695, %v711_v60  ;;  %v699_v36 = vrot.slane %v666_v1, %v698_v35  ;;  %v720_v5 = vsub.f32 %v3187_v62, %v3244_v33  ;;  %v744_v6 = vmul.f32 1.442695, %v718_v61 }
 0x25e   :  { %2808 = vpow2.f32 %v724_v57  ;;  %v732_v45 = vmul.f32 1.442695, %v712_v2  ;;  %v686_v62 = vsub.s32 4, %v3078_v26  ;;  %v714_v22 = vsub.f32 %v3141_v39, %v683_v7 }
 0x25f   :  { %2810 = vpow2.f32 %v726_v58  ;;  %v722_v41 = vsub.f32 %v3202_v9, %v699_v36  ;;  %v748_v12 = vmul.f32 1.442695, %v720_v5  ;;  %v734_v23 = vmul.f32 1.442695, %v713_v8 }
 0x260   :  { %2812 = vpow2.f32 %v728_v34  ;;  %v687_v9 = vrot.slane %v666_v1, %v686_v62  ;;  %v715_v27 = vsub.f32 %v3143_v40, %v683_v7  ;;  %v736_v28 = vmul.f32 1.442695, %v714_v22 }
 0x261   :  { %2814 = vpow2.f32 %v730_v4  ;;  %v752_v25 = vmul.f32 1.442695, %v722_v41  ;;  %v719_v50 = vsub.f32 %v3161_v47, %v3237_v56  ;;  %v723_v60 = vsub.f32 %v3206_v13, %v699_v36 }
 0x262   :  { %2816 = vpow2.f32 %v744_v6  ;;  %v716_v30 = vsub.f32 %v3171_v52, %v687_v9  ;;  %v738_v31 = vmul.f32 1.442695, %v715_v27  ;;  %v717_v1 = vsub.f32 %v3175_v55, %v687_v9 }
 0x263   :  { %2818 = vpow2.f32 %v732_v45  ;;  %v721_v55 = vsub.f32 %v3191_v3, %v3244_v33  ;;  %v746_v58 = vmul.f32 1.442695, %v719_v50  ;;  %v754_v34 = vmul.f32 1.442695, %v723_v60 }
 0x264   :  { %2820 = vpow2.f32 %v748_v12  ;;  %v740_v46 = vmul.f32 1.442695, %v716_v30  ;;  %v742_v53 = vmul.f32 1.442695, %v717_v1 }
 0x265   :  { %2822 = vpow2.f32 %v734_v23  ;;  %v750_v47 = vmul.f32 1.442695, %v721_v55 }
 0x266   :  { %2824 = vpow2.f32 %v752_v25 }
 0x267   :  { %2826 = vpow2.f32 %v736_v28 }
 0x268   :  { %v3257_v11 = vpop.eup %2808  ;;  %2828 = vpow2.f32 %v738_v31 }
 0x269   :  { %v3260_v14 = vpop.eup %2810  ;;  %773 = vperm.xlu1 %2690, %v3257_v11   ;;  %2830 = vpow2.f32 %v740_v46 }
 0x26a   :  { %776 = vperm.xlu0 %2691, %v3260_v14   ;;  %v3266_v43 = vpop.eup %2812  ;;  %2832 = vpow2.f32 %v742_v53 }
 0x26b   :  { %v3272_v29 = vpop.eup %2814  ;;  %2834 = vpow2.f32 %v746_v58 }
 0x26c   :  { %v3275_v39 = vpop.eup %2816  ;;  %2836 = vpow2.f32 %v750_v47 }
 0x26d   :  { %779 = vperm.xlu1 %2690, %v3266_v43   ;;  %v3279_v24 = vpop.eup %2818  ;;  %2838 = vpow2.f32 %v754_v34 }
 0x26e   :  { %803 = vperm.xlu0 %2691, %v3275_v39   ;;  %v3282_v40 = vpop.eup %2820 }
 0x26f   :  { %v3286_v49 = vpop.eup %2822 }
 0x270   :  { %v3289_v52 = vpop.eup %2824 }
 0x271   :  { %782 = vperm.xlu1 %2690, %v3272_v29   ;;  %v3294_v57 = vpop.eup %2826 }
 0x272   :  { %809 = vperm.xlu0 %2691, %v3282_v40   ;;  %v3299_v59 = vpop.eup %2828 }
 0x273   :  { %v3303_v56 = vpop.eup %2830 }
 0x274   :  { %v3306_v61 = vpop.eup %2832 }
 0x275   :  { %785 = vperm.xlu1 %2690, %v3279_v24   ;;  %v3309_v3 = vpop.eup %2834 }
 0x276   :  { %815 = vperm.xlu0 %2691, %v3289_v52   ;;  %v3312_v33 = vpop.eup %2836 }
 0x277   :  { %v3315_v13 = vpop.eup %2838 }
 0x279   :  { %788 = vperm.xlu1 %2690, %v3286_v49  }
 0x27d   :  { %791 = vperm.xlu1 %2690, %v3294_v57  }
 0x281   :  { %794 = vperm.xlu1 %2690, %v3299_v59  }
 0x285   :  { %797 = vperm.xlu1 %2690, %v3303_v56  }
 0x289   :  { %800 = vperm.xlu1 %2690, %v3306_v61  }
 0x28d   :  { %806 = vperm.xlu1 %2690, %v3309_v3  }
 0x291   :  { %812 = vperm.xlu1 %2690, %v3312_v33  }
 0x295   :  { %818 = vperm.xlu1 %2690, %v3315_v13  }
 0x2e8   :  { %v774_v2 = vpop.permute.xlu1 %773 }
 0x2e9   :  { %v777_v8 = vpop.permute.xlu0 %776  ;;  %v823_v30 = vrot.slane %v774_v2, %v3153_v44 }
 0x2ea   :  { %v827_v28 = vrot.slane %v777_v8, %v3148_v42 }
 0x2ec   :  { %v780_v4 = vpop.permute.xlu1 %779  ;;  %v828_v2 = vsel %vm583_vm2, %v827_v28, %v823_v30 }
 0x2ed   :  { %v804_v12 = vpop.permute.xlu0 %803  ;;  %v832_v31 = vrot.slane %v780_v4, %v3153_v44 }
 0x2ee   :  { %v868_v4 = vrot.slane %v804_v12, %v3153_v44 }
 0x2f0   :  { %v783_v36 = vpop.permute.xlu1 %782 }
 0x2f1   :  { %v836_v23 = vrot.slane %v783_v36, %v3148_v42  ;;  %v810_v25 = vpop.permute.xlu0 %809 }
 0x2f3   :  { %v837_v53 = vsel %vm583_vm2, %v836_v23, %v832_v31 }
 0x2f4   :  { %v786_v5 = vpop.permute.xlu1 %785  ;;  %v892_v8 = vsel %vm648_vm3, %v837_v53, %v828_v2 }
 0x2f5   :  { %v841_v46 = vrot.slane %v786_v5, %v3153_v44 }
 0x2f8   :  { %v789_v6 = vpop.permute.xlu1 %788 }
 0x2f9   :  { %v845_v9 = vrot.slane %v789_v6, %v3148_v42  ;;  %v877_v6 = vrot.slane %v810_v25, %v3153_v44 }
 0x2fb   :  { %v846_v60 = vsel %vm583_vm2, %v845_v9, %v841_v46 }
 0x2fc   :  { %v792_v7 = vpop.permute.xlu1 %791 }
 0x2fd   :  { %v850_v55 = vrot.slane %v792_v7, %v3153_v44  ;;  %v816_v7 = vpop.permute.xlu0 %815 }
 0x300   :  { %v795_v45 = vpop.permute.xlu1 %794 }
 0x301   :  { %v854_v1 = vrot.slane %v795_v45, %v3148_v42 }
 0x303   :  { %v855_v36 = vsel %vm583_vm2, %v854_v1, %v850_v55 }
 0x304   :  { %v798_v41 = vpop.permute.xlu1 %797 }
 0x305   :  { %v859_v47 = vrot.slane %v798_v41, %v3153_v44 }
 0x308   :  { %v801_v22 = vpop.permute.xlu1 %800 }
 0x309   :  { %v863_v50 = vrot.slane %v801_v22, %v3148_v42  ;;  %v893_v22 = vsel %vm650_vm4, %v846_v60, %v892_v8 }
 0x30a   :  { %v894_v23 = vsel %vm652_vm5, %v855_v36, %v893_v22 }
 0x30b   :  { %v864_v45 = vsel %vm583_vm2, %v863_v50, %v859_v47 }
 0x30c   :  { %v807_v27 = vpop.permute.xlu1 %806  ;;  %v895_v28 = vsel %vm654_vm6, %v864_v45, %v894_v23 }
 0x30d   :  { %v872_v58 = vrot.slane %v807_v27, %v3148_v42  ;;  %v886_v27 = vrot.slane %v816_v7, %v3153_v44 }
 0x30f   :  { %v873_v41 = vsel %vm583_vm2, %v872_v58, %v868_v4 }
 0x310   :  { %v813_v34 = vpop.permute.xlu1 %812  ;;  %v896_v30 = vsel %vm656_vm7, %v873_v41, %v895_v28 }
 0x311   :  { %v881_v5 = vrot.slane %v813_v34, %v3148_v42 }
 0x313   :  { %v882_v9 = vsel %vm583_vm2, %v881_v5, %v877_v6 }
 0x314   :  { %v819_v12 = vpop.permute.xlu1 %818  ;;  %v897_v1 = vsel %vm658_vm8, %v882_v9, %v896_v30 }
 0x315   :  { %v890_v25 = vrot.slane %v819_v12, %v3148_v42 }
 0x317   :  { %v891_v31 = vsel %vm583_vm2, %v890_v25, %v886_v27 }
 0x318   :  { %v898_v46 = vsel %vm660_vm9, %v891_v31, %v897_v1 }
 0x319   :  { %v900_v50 = vsel %vm663_vm10, %v898_v46, 0.0 }
 0x31a   :  { %901 = vadd.xlane.f32.xlu0 %v900_v50 }
 0x3a7   :  { %v902_v53 = vpop.xlane.xlu0 %901 }
 0x3a8   :  { %v923_v55 = vrot.slane %v902_v53, %v686_v62  ;;  %v907_v58 = vrot.slane %v902_v53, %v3085_v37  ;;  %v935_v60 = vrot.slane %v902_v53, %v698_v35  ;;  %v911_v47 = vrot.slane %v902_v53, %v3223_v38 }
 0x3a9   :  { %v915_v36 = vrot.slane %v902_v53, %v3231_v51  ;;  %v2898_v35 = vmov 0.0|0.0  }
 0x3aa   :  { %2840 = vrcp.f32 %v923_v55  ;;  %2652 = vmatprep.subr.bf16.mxu0 %v2898_v35 }
 0x3ab   :  { %2842 = vrcp.f32 %v907_v58  ;;  %2654 = vmatpush3.bf16.msra.mxu0 %v3017_v10  ;;  %v927_v10 = vrot.slane %v902_v53, %v690_v48 }
 0x3ac   :  { %2844 = vrcp.f32 %v935_v60  ;;  %2655 = vmatprep.subr.bf16.mxu0 %v2898_v35 }
 0x3ad   :  { %2846 = vrcp.f32 %v911_v47 }
 0x3ae   :  { %2848 = vrcp.f32 %v915_v36 }
 0x3b4   :  { %v2841_v34 = vpop.eup %2840 }
 0x3b5   :  { %v2843_v2 = vpop.eup %2842  ;;  %v957_v4 = vmul.f32 %v2841_v34, %v3303_v56 }
 0x3b6   :  { %v2845_v5 = vpop.eup %2844  ;;  %v945_v62 = vmul.f32 %v2843_v2, %v3257_v11  ;;  %v946_v8 = vmul.f32 %v2843_v2, %v3260_v14  ;;  %v919_v11 = vrot.slane %v902_v53, %v682_v63 }
 0x3b7   :  { %1343 = vperm.xlu0 %2691, %v957_v4   ;;  %v966_v6 = vmul.f32 %v2845_v5, %v3289_v52  ;;  %v2847_v7 = vpop.eup %2846 }
 0x3b8   :  { %987 = vperm.xlu1 %2690, %v945_v62   ;;  %v948_v56 = vmul.f32 %v2847_v7, %v3266_v43  ;;  %2850 = vrcp.f32 %v919_v11  ;;  %v949_v52 = vmul.f32 %v2847_v7, %v3272_v29  ;;  %v2849_v45 = vpop.eup %2848  ;;  %v931_v43 = vrot.slane %v902_v53, %v694_v54 }
 0x3b9   :  { %v951_v14 = vmul.f32 %v2849_v45, %v3279_v24  ;;  %v952_v22 = vmul.f32 %v2849_v45, %v3286_v49  ;;  %2852 = vrcp.f32 %v927_v10  ;;  %v958_v24 = vmul.f32 %v2841_v34, %v3306_v61  ;;  %v2716_v45 = vld [vmem:[%s3646_s8 + $0x18] ss:$12 sps:$4 sm:$0xff]   ;;  %v2719_v10 = vld [vmem:[%s3646_s8 + $0x20] ss:$12 sps:$4 sm:$0xff]  }
 0x3ba   :  { %2854 = vrcp.f32 %v931_v43  ;;  %v967_v54 = vmul.f32 %v2845_v5, %v3315_v13  ;;  %v2724_v43 = vld [vmem:[%s3646_s8 + $0x48] ss:$12 sps:$4 sm:$0xff]  }
 0x3bb   :  { %1610 = vperm.xlu0 %2691, %v966_v6  }
 0x3bc   :  { %990 = vperm.xlu1 %2690, %v946_v8  }
 0x3c0   :  { %1076 = vperm.xlu1 %2690, %v948_v56  }
 0x3c2   :  { %v2851_v41 = vpop.eup %2850 }
 0x3c3   :  { %v954_v63 = vmul.f32 %v2851_v41, %v3294_v57  ;;  %v955_v29 = vmul.f32 %v2851_v41, %v3299_v59  ;;  %v2853_v23 = vpop.eup %2852  ;;  %v2723_v41 = vld [vmem:[%s3646_s8 + $0x38] ss:$12 sps:$4 sm:$0xff]  }
 0x3c4   :  { %1079 = vperm.xlu1 %2690, %v949_v52   ;;  %v960_v48 = vmul.f32 %v2853_v23, %v3275_v39  ;;  %v961_v49 = vmul.f32 %v2853_v23, %v3309_v3  ;;  %v2855_v9 = vpop.eup %2854  ;;  %v2730_v23 = vld [vmem:[%s3646_s8 + $0x64] ss:$12 sps:$4 sm:$0xff]  }
 0x3c5   :  { %v963_v57 = vmul.f32 %v2855_v9, %v3282_v40  ;;  %v964_v26 = vmul.f32 %v2855_v9, %v3312_v33  ;;  %v2732_v9 = vld [vmem:[%s3646_s8 + $0x78] ss:$12 sps:$4 sm:$0xff]  }
 0x3c8   :  { %1165 = vperm.xlu1 %2690, %v951_v14   ;;  %v2718_v14 = vld [vmem:[%s3646_s8 + $0x1c] ss:$12 sps:$4 sm:$0xff]  }
 0x3cc   :  { %1168 = vperm.xlu1 %2690, %v952_v22   ;;  %v2722_v22 = vld [vmem:[%s3646_s8 + $0x34] ss:$12 sps:$4 sm:$0xff]  }
 0x3d0   :  { %1254 = vperm.xlu1 %2690, %v954_v63   ;;  %v2720_v63 = vld [vmem:[%s3646_s8 + $0x30] ss:$12 sps:$4 sm:$0xff]  }
 0x3d4   :  { %1257 = vperm.xlu1 %2690, %v955_v29   ;;  %v2726_v29 = vld [vmem:[%s3646_s8 + $0x4c] ss:$12 sps:$4 sm:$0xff]  }
 0x3d8   :  { %1346 = vperm.xlu1 %2690, %v958_v24   ;;  %v2727_v24 = vld [vmem:[%s3646_s8 + $0x50] ss:$12 sps:$4 sm:$0xff]  }
 0x3dc   :  { %1432 = vperm.xlu1 %2690, %v960_v48   ;;  %v2731_v48 = vld [vmem:[%s3646_s8 + $0x68] ss:$12 sps:$4 sm:$0xff]  }
 0x3e0   :  { %1435 = vperm.xlu1 %2690, %v961_v49   ;;  %v2728_v49 = vld [vmem:[%s3646_s8 + $0x60] ss:$12 sps:$4 sm:$0xff]  }
 0x3e4   :  { %1521 = vperm.xlu1 %2690, %v963_v57   ;;  %v2734_v57 = vld [vmem:[%s3646_s8 + $0x7c] ss:$12 sps:$4 sm:$0xff]  }
 0x3e8   :  { %1524 = vperm.xlu1 %2690, %v964_v26   ;;  %v2735_v26 = vld [vmem:[%s3646_s8 + $0x80] ss:$12 sps:$4 sm:$0xff]  }
 0x3ec   :  { %1613 = vperm.xlu1 %2690, %v967_v54   ;;  %v2736_v54 = vld [vmem:[%s3646_s8 + $0x90] ss:$12 sps:$4 sm:$0xff]  }
 0x436   :  { %v1344_v55 = vpop.permute.xlu0 %1343 }
 0x437   :  { %v988_v59 = vpop.permute.xlu1 %987  ;;  %v1351_v47 = vrot.slane %v1344_v55, %v3153_v44 }
 0x438   :  { %v995_v12 = vrot.slane %v988_v59, %v3153_v44  ;;  %v2738_v59 = vld [vmem:[%s3646_s8 + $0x94] ss:$12 sps:$4 sm:$0xff]  }
 0x43a   :  { %v1611_v7 = vpop.permute.xlu0 %1610 }
 0x43b   :  { %v991_v61 = vpop.permute.xlu1 %990  ;;  %v1618_v52 = vrot.slane %v1611_v7, %v3153_v44 }
 0x43c   :  { %v999_v39 = vrot.slane %v991_v61, %v3148_v42  ;;  %v2739_v61 = vld [vmem:[%s3646_s8 + $0x98] ss:$12 sps:$4 sm:$0xff]  }
 0x43e   :  { %v1000_v27 = vsel %vm583_vm2, %v999_v39, %v995_v12  ;;  %v2742_v12 = vld [vmem:[%s3646_s8 + $0xac] ss:$12 sps:$4 sm:$0xff]   ;;  %v2743_v39 = vld [vmem:[%s3646_s8 + $0xb0] ss:$12 sps:$4 sm:$0xff]  }
 0x43f   :  { %2557 = vmatmul.mubr.msk.f32.vlgmr.msra.gmra.mrb[4].mxu0 %vm663_vm10, %v1000_v27  ;;  %v1077_v3 = vpop.permute.xlu1 %1076  ;;  %v2740_v27 = vld [vmem:[%s3646_s8 + $0xa8] ss:$12 sps:$4 sm:$0xff]  }
 0x440   :  { %2657 = vmatpush3.bf16.msra.mxu0 %v3038_v15  ;;  %2563 = vmatprep.mubr.msk.f32.mxu0 %vm2895_vm0, %v2894_v0  ;;  %v1084_v33 = vrot.slane %v1077_v3, %v3153_v44  ;;  %v2749_v3 = vld [vmem:[%s3647_s9 + $0x4] ss:$12 sps:$4 sm:$0xff]  }
 0x441   :  { %2658 = vmatprep.subr.bf16.mxu0 %v2898_v35 }
 0x443   :  { %v1080_v40 = vpop.permute.xlu1 %1079 }
 0x444   :  { %v1088_v13 = vrot.slane %v1080_v40, %v3148_v42  ;;  %v2746_v40 = vld [vmem:[%s3645_s7 + $0x4] ss:$12 sps:$4 sm:$0xff]  }
 0x446   :  { %v1089_v28 = vsel %vm583_vm2, %v1088_v13, %v1084_v33 }
 0x447   :  { %2564 = vmatmul.mubr.msk.f32.vlgmr.msra.gmra.mrb[6].mxu0 %vm663_vm10, %v1089_v28  ;;  %v1166_v25 = vpop.permute.xlu1 %1165 }
 0x448   :  { %2660 = vmatpush3.bf16.msra.mxu0 %v3043_v16  ;;  %2570 = vmatprep.mubr.msk.f32.mxu0 %vm2895_vm0, %v2894_v0  ;;  %v1173_v30 = vrot.slane %v1166_v25, %v3153_v44 }
 0x449   :  { %2661 = vmatprep.subr.bf16.mxu0 %v2898_v35 }
 0x44b   :  { %v1169_v15 = vpop.permute.xlu1 %1168 }
 0x44c   :  { %v1177_v31 = vrot.slane %v1169_v15, %v3148_v42 }
 0x44e   :  { %v1178_v1 = vsel %vm583_vm2, %v1177_v31, %v1173_v30 }
 0x44f   :  { %2571 = vmatmul.mubr.msk.f32.vlgmr.msra.gmra.mrb[8].mxu0 %vm663_vm10, %v1178_v1  ;;  %v1255_v46 = vpop.permute.xlu1 %1254 }
 0x450   :  { %2663 = vmatpush3.bf16.msra.mxu0 %v3050_v17  ;;  %2577 = vmatprep.mubr.msk.f32.mxu0 %vm2895_vm0, %v2894_v0  ;;  %v1262_v50 = vrot.slane %v1255_v46, %v3153_v44 }
 0x451   :  { %2664 = vmatprep.subr.bf16.mxu0 %v2898_v35 }
 0x453   :  { %v1258_v16 = vpop.permute.xlu1 %1257 }
 0x454   :  { %v1266_v53 = vrot.slane %v1258_v16, %v3148_v42 }
 0x456   :  { %v1267_v58 = vsel %vm583_vm2, %v1266_v53, %v1262_v50 }
 0x457   :  { %2578 = vmatmul.mubr.msk.f32.vlgmr.msra.gmra.mrb[10].mxu0 %vm663_vm10, %v1267_v58  ;;  %v1347_v60 = vpop.permute.xlu1 %1346 }
 0x458   :  { %v1355_v17 = vrot.slane %v1347_v60, %v3148_v42  ;;  %2666 = vmatpush3.bf16.msra.mxu0 %v3055_v18  ;;  %2584 = vmatprep.mubr.msk.f32.mxu0 %vm2895_vm0, %v2894_v0 }
 0x459   :  { %2667 = vmatprep.subr.bf16.mxu0 %v2898_v35 }
 0x45a   :  { %v1356_v34 = vsel %vm583_vm2, %v1355_v17, %v1351_v47 }
 0x45b   :  { %2585 = vmatmul.mubr.msk.f32.vlgmr.msra.gmra.mrb[12].mxu0 %vm663_vm10, %v1356_v34  ;;  %v1433_v2 = vpop.permute.xlu1 %1432 }
 0x45c   :  { %2669 = vmatpush3.bf16.msra.mxu0 %v3062_v19  ;;  %2591 = vmatprep.mubr.msk.f32.mxu0 %vm2895_vm0, %v2894_v0  ;;  %v1440_v18 = vrot.slane %v1433_v2, %v3153_v44 }
 0x45d   :  { %2670 = vmatprep.subr.bf16.mxu0 %v2898_v35 }
 0x45f   :  { %v1436_v4 = vpop.permute.xlu1 %1435 }
 0x460   :  { %v1444_v36 = vrot.slane %v1436_v4, %v3148_v42 }
 0x462   :  { %v1445_v5 = vsel %vm583_vm2, %v1444_v36, %v1440_v18 }
 0x463   :  { %2592 = vmatmul.mubr.msk.f32.vlgmr.msra.gmra.mrb[14].mxu0 %vm663_vm10, %v1445_v5  ;;  %v1522_v62 = vpop.permute.xlu1 %1521 }
 0x464   :  { %2672 = vmatpush3.bf16.msra.mxu0 %v3067_v20  ;;  %2598 = vmatprep.mubr.msk.f32.mxu0 %vm2895_vm0, %v2894_v0  ;;  %v1529_v6 = vrot.slane %v1522_v62, %v3153_v44  ;;  %v2712_v44 = vld [vmem:[%s3646_s8] ss:$12 sps:$4 sm:$0xff]  }
 0x465   :  { %2673 = vmatprep.subr.bf16.mxu0 %v2898_v35 }
 0x467   :  { %v1525_v19 = vpop.permute.xlu1 %1524 }
 0x468   :  { %v1533_v8 = vrot.slane %v1525_v19, %v3148_v42 }
 0x46a   :  { %v1534_v11 = vsel %vm583_vm2, %v1533_v8, %v1529_v6 }
 0x46b   :  { %2599 = vmatmul.mubr.msk.f32.vlgmr.msra.gmra.mrb[16].mxu0 %vm663_vm10, %v1534_v11  ;;  %v1614_v56 = vpop.permute.xlu1 %1613 }
 0x46c   :  { %2675 = vmatpush3.bf16.msra.mxu0 %v3074_v21  ;;  %v1622_v20 = vrot.slane %v1614_v56, %v3148_v42  ;;  %2605 = vmatprep.mubr.msk.f32.mxu0 %vm2895_vm0, %v2894_v0  ;;  %v2714_v21 = vld [vmem:[%s3646_s8 + $0x4] ss:$12 sps:$4 sm:$0xff]   ;;  %v2715_v42 = vld [vmem:[%s3646_s8 + $0x8] ss:$12 sps:$4 sm:$0xff]  }
 0x46d   :  { %2608 = vmatprep.subr.bf16.mxu0 %v2894_v0  ;;  %1913 = vmatprep.subr.bf16.mxu1 %v2714_v21 }
 0x46e   :  { %v1623_v35 = vsel %vm583_vm2, %v1622_v20, %v1618_v52  ;;  %1914 = vmatpush1.bf16.msra.mxu1 %v2712_v44 }
 0x46f   :  { %2606 = vmatmul.mubr.msk.f32.vlgmr.msra.gmra.mrb[18].mxu0 %vm663_vm10, %v1623_v35  ;;  %1915 = vmatprep.subr.bf16.mxu1 %v2718_v14 }
 0x470   :  { %2624 = vmatprep.mubr.msk.bf16.mxu0 %vm2895_vm0, %v2894_v0  ;;  %2609 = vmatpush3.bf16.msra.mxu0 %v2715_v42 }
 0x471   :  { %2610 = vmatprep.subr.bf16.mxu0 %v2894_v0 }
 0x472   :  { %1916 = vmatpush1.bf16.msra.mxu1 %v2716_v45 }
 0x473   :  { %1917 = vmatprep.subr.bf16.mxu1 %v2722_v22 }
 0x474   :  { %2611 = vmatpush3.bf16.msra.mxu0 %v2719_v10 }
 0x475   :  { %2612 = vmatprep.subr.bf16.mxu0 %v2894_v0 }
 0x476   :  { %1918 = vmatpush1.bf16.msra.mxu1 %v2720_v63 }
 0x477   :  { %1919 = vmatprep.subr.bf16.mxu1 %v2726_v29 }
 0x478   :  { %2613 = vmatpush3.bf16.msra.mxu0 %v2723_v41 }
 0x479   :  { %2614 = vmatprep.subr.bf16.mxu0 %v2894_v0 }
 0x47a   :  { %1920 = vmatpush1.bf16.msra.mxu1 %v2724_v43 }
 0x47b   :  { %1921 = vmatprep.subr.bf16.mxu1 %v2730_v23 }
 0x47c   :  { %2615 = vmatpush3.bf16.msra.mxu0 %v2727_v24 }
 0x47d   :  { %2616 = vmatprep.subr.bf16.mxu0 %v2894_v0 }
 0x47e   :  { %1922 = vmatpush1.bf16.msra.mxu1 %v2728_v49  ;;  %v2747_v49 = vld [vmem:[%s3647_s9] ss:$12 sps:$4 sm:$0xff]  }
 0x47f   :  { %1923 = vmatprep.subr.bf16.mxu1 %v2734_v57  ;;  %v2752_v57 = vld [vmem:[%s3645_s7 + $0x1c] ss:$12 sps:$4 sm:$0xff]  }
 0x480   :  { %2617 = vmatpush3.bf16.msra.mxu0 %v2731_v48  ;;  %v2744_v48 = vld [vmem:[%s3645_s7] ss:$12 sps:$4 sm:$0xff]  }
 0x481   :  { %2618 = vmatprep.subr.bf16.mxu0 %v2894_v0 }
 0x482   :  { %1924 = vmatpush1.bf16.msra.mxu1 %v2732_v9 }
 0x483   :  { %1925 = vmatprep.subr.bf16.mxu1 %v2738_v59  ;;  %v2753_v59 = vld [vmem:[%s3647_s9 + $0x18] ss:$12 sps:$4 sm:$0xff]  }
 0x484   :  { %2619 = vmatpush3.bf16.msra.mxu0 %v2735_v26  ;;  %v2755_v26 = vld [vmem:[%s3647_s9 + $0x1c] ss:$12 sps:$4 sm:$0xff]  }
 0x485   :  { %2620 = vmatprep.subr.bf16.mxu0 %v2894_v0 }
 0x486   :  { %1926 = vmatpush1.bf16.msra.mxu1 %v2736_v54  ;;  %v2750_v54 = vld [vmem:[%s3645_s7 + $0x18] ss:$12 sps:$4 sm:$0xff]  }
 0x487   :  { %1927 = vmatprep.subr.bf16.mxu1 %v2742_v12  ;;  %v2761_v12 = vld [vmem:[%s3647_s9 + $0x34] ss:$12 sps:$4 sm:$0xff]  }
 0x488   :  { %2621 = vmatpush3.bf16.msra.mxu0 %v2739_v61  ;;  %v2758_v61 = vld [vmem:[%s3645_s7 + $0x34] ss:$12 sps:$4 sm:$0xff]  }
 0x489   :  { %2622 = vmatprep.subr.bf16.mxu0 %v2894_v0 }
 0x48a   :  { %1928 = vmatpush1.bf16.msra.mxu1 %v2740_v27  ;;  %v2759_v27 = vld [vmem:[%s3647_s9 + $0x30] ss:$12 sps:$4 sm:$0xff]  }
 0x48b   :  { %2061 = vmatprep.subr.bf16.mxu1 %v2746_v40  ;;  %v2762_v40 = vld [vmem:[%s3645_s7 + $0x48] ss:$12 sps:$4 sm:$0xff]  }
 0x48c   :  { %2623 = vmatpush3.bf16.msra.mxu0 %v2743_v39  ;;  %v2756_v39 = vld [vmem:[%s3645_s7 + $0x30] ss:$12 sps:$4 sm:$0xff]  }
 0x48d   :  { %2222 = vmatprep.subr.bf16.mxu0 %v2749_v3  ;;  %v2764_v3 = vld [vmem:[%s3645_s7 + $0x4c] ss:$12 sps:$4 sm:$0xff]  }
 0x512   :  { %v1069_v33 = vpop.f32.mrb[4].mxu0 }
 0x513   :  { %v2558_v13 = vpop.f32.mrb[5].mxu0  ;;  %v1713_v25 = vpack.c.bf16 %v1069_v33, %v1069_v33  ;;  %v2765_v33 = vld [vmem:[%s3647_s9 + $0x48] ss:$12 sps:$4 sm:$0xff]  }
 0x514   :  { %v1696_v13 = vld [vmem:[%s3640_s2] sm:$0xf] }
 0x515   :  { %v1761_v1 = vunpack.c.l.b16 %v1713_v25  ;;  %v2868_v25 = vld [vmem:[%s3639_s1] sm:$0xf] }
 0x51a   :  { %v1158_v28 = vpop.f32.mrb[6].mxu0 }
 0x51b   :  { %v1714_v15 = vpack.c.bf16 %v1158_v28, %v1158_v28  ;;  %v2565_v30 = vpop.f32.mrb[7].mxu0  ;;  %v2768_v28 = vld [vmem:[%s3645_s7 + $0x8] ss:$12 sps:$4 sm:$0xff]  }
 0x51c   :  { %v2770_v30 = vld [vmem:[%s3645_s7 + $0x38] ss:$12 sps:$4 sm:$0xff]  }
 0x51d   :  { %v1762_v31 = vunpack.c.l.b16 %v1714_v15  ;;  %v2769_v15 = vld [vmem:[%s3645_s7 + $0x20] ss:$12 sps:$4 sm:$0xff]  }
 0x51f   :  { %v1769_v46 = vrot.slane %v1762_v31, 7  ;;  %v2771_v31 = vld [vmem:[%s3645_s7 + $0x50] ss:$12 sps:$4 sm:$0xff]  }
 0x521   :  { %v1770_v16 = vsel %vm648_vm3, %v1769_v46, %v1761_v1  ;;  %v2772_v1 = vld [vmem:[%s3647_s9 + $0x8] ss:$12 sps:$4 sm:$0xff]   ;;  %v2773_v46 = vld [vmem:[%s3647_s9 + $0x20] ss:$12 sps:$4 sm:$0xff]  }
 0x522   :  { %v1247_v50 = vpop.f32.mrb[8].mxu0 }
 0x523   :  { %v1715_v53 = vpack.c.bf16 %v1247_v50, %v1247_v50  ;;  %v2572_v55 = vpop.f32.mrb[9].mxu0  ;;  %v2775_v50 = vld [vmem:[%s3647_s9 + $0x50] ss:$12 sps:$4 sm:$0xff]  }
 0x525   :  { %v1763_v58 = vunpack.c.l.b16 %v1715_v53 }
 0x527   :  { %v1771_v60 = vrot.slane %v1763_v58, 6 }
 0x529   :  { %v1772_v47 = vsel %vm650_vm4, %v1771_v60, %v1770_v16  ;;  %v2774_v16 = vld [vmem:[%s3647_s9 + $0x38] ss:$12 sps:$4 sm:$0xff]  }
 0x52a   :  { %v1336_v17 = vpop.f32.mrb[10].mxu0 }
 0x52b   :  { %v1716_v34 = vpack.c.bf16 %v1336_v17, %v1336_v17  ;;  %v2579_v2 = vpop.f32.mrb[11].mxu0 }
 0x52d   :  { %v1764_v4 = vunpack.c.l.b16 %v1716_v34 }
 0x52e   :  { %v1425_v18 = vpop.f32.mrb[12].mxu0 }
 0x52f   :  { %v1773_v36 = vrot.slane %v1764_v4, 5  ;;  %v1717_v5 = vpack.c.bf16 %v1425_v18, %v1425_v18  ;;  %v2586_v62 = vpop.f32.mrb[13].mxu0  ;;  %v2306_v4 = vld [vmem:[#allocation2] sm:$0x7] }
 0x531   :  { %v1774_v19 = vsel %vm652_vm5, %v1773_v36, %v1772_v47  ;;  %v1765_v6 = vunpack.c.l.b16 %v1717_v5 }
 0x533   :  { %v1775_v8 = vrot.slane %v1765_v6, 4 }
 0x535   :  { %v1776_v7 = vsel %vm654_vm6, %v1775_v8, %v1774_v19  ;;  %v2311_v19 = vrot.slane %v2306_v4, %v3085_v37 }
 0x536   :  { %v1514_v11 = vpop.f32.mrb[14].mxu0 }
 0x537   :  { %v1718_v56 = vpack.c.bf16 %v1514_v11, %v1514_v11  ;;  %v2593_v52 = vpop.f32.mrb[15].mxu0 }
 0x539   :  { %v1766_v20 = vunpack.c.l.b16 %v1718_v56 }
 0x53b   :  { %v1777_v35 = vrot.slane %v1766_v20, 3 }
 0x53d   :  { %v1778_v44 = vsel %vm656_vm7, %v1777_v35, %v1776_v7 }
 0x53e   :  { %v1603_v21 = vpop.f32.mrb[16].mxu0 }
 0x53f   :  { %v1719_v42 = vpack.c.bf16 %v1603_v21, %v1603_v21  ;;  %v2600_v45 = vpop.f32.mrb[17].mxu0  ;;  %v2315_v21 = vrot.slane %v2306_v4, %v3223_v38 }
 0x541   :  { %v1767_v14 = vunpack.c.l.b16 %v1719_v42 }
 0x542   :  { %v1692_v10 = vpop.f32.mrb[18].mxu0 }
 0x543   :  { %v1779_v22 = vrot.slane %v1767_v14, 2  ;;  %v1720_v41 = vpack.c.bf16 %v1692_v10, %v1692_v10  ;;  %v2607_v63 = vpop.f32.mrb[19].mxu0 }
 0x545   :  { %v1780_v43 = vsel %vm658_vm8, %v1779_v22, %v1778_v44  ;;  %v1768_v29 = vunpack.c.l.b16 %v1720_v41 }
 0x547   :  { %v1781_v24 = vrot.slane %v1768_v29, 1  ;;  %v2319_v29 = vrot.slane %v2306_v4, %v3231_v51 }
 0x549   :  { %v1782_v23 = vsel %vm660_vm9, %v1781_v24, %v1780_v43 }
 0x54a   :  { %v1783_v9 = vpack.c.b16 %v1782_v23, %v1782_v23 }
 0x54c   :  { %1946 = vmatmul.mubr.bf16.vlgmr.msra.gmra.mrb[16].mxu1 %v1783_v9  ;;  %2625 = vmatmul.mubr.bf16.vlgmr.msra.gmra.mrb[20].mxu0 %v1783_v9 }
 0x54d   :  { %2062 = vmatpush1.bf16.msra.mxu1 %v2744_v48  ;;  %2223 = vmatpush1.bf16.msra.mxu0 %v2747_v49 }
 0x54e   :  { %2063 = vmatprep.subr.bf16.mxu1 %v2752_v57  ;;  %2224 = vmatprep.subr.bf16.mxu0 %v2755_v26 }
 0x54f   :  { %2093 = vmatprep.mubr.bf16.mxu1 %v2897_v32  ;;  %2254 = vmatprep.mubr.bf16.mxu0 %v2897_v32  ;;  %v2767_v32 = vld [vmem:[%s3647_s9 + $0x4c] ss:$12 sps:$4 sm:$0xff]  }
 0x551   :  { %2064 = vmatpush1.bf16.msra.mxu1 %v2750_v54  ;;  %2225 = vmatpush1.bf16.msra.mxu0 %v2753_v59 }
 0x552   :  { %2065 = vmatprep.subr.bf16.mxu1 %v2758_v61  ;;  %2226 = vmatprep.subr.bf16.mxu0 %v2761_v12 }
 0x555   :  { %2066 = vmatpush1.bf16.msra.mxu1 %v2756_v39  ;;  %2227 = vmatpush1.bf16.msra.mxu0 %v2759_v27 }
 0x556   :  { %2067 = vmatprep.subr.bf16.mxu1 %v2764_v3  ;;  %2228 = vmatprep.subr.bf16.mxu0 %v2767_v32 }
 0x559   :  { %2068 = vmatpush1.bf16.msra.mxu1 %v2762_v40  ;;  %2229 = vmatpush1.bf16.msra.mxu0 %v2765_v33 }
 0x55a   :  { %2628 = vmatprep.subr.bf16.mxu1 %v2894_v0 }
 0x55c   :  { %2426 = vmatmul.mubr.msk.bf16.vlgmr.msra.gmra.mrb[20].mxu1 %vm110_vm1, %v1696_v13  ;;  %2440 = vmatmul.mubr.msk.bf16.vlgmr.msra.gmra.mrb[24].mxu0 %vm110_vm1, %v2868_v25 }
 0x55d   :  { %2629 = vmatpush3.bf16.msra.mxu1 %v2768_v28  ;;  %2636 = vmatprep.mubr.msk.bf16.mxu1 %vm2895_vm0, %v2894_v0 }
 0x55e   :  { %2630 = vmatprep.subr.bf16.mxu1 %v2894_v0 }
 0x561   :  { %2631 = vmatpush3.bf16.msra.mxu1 %v2769_v15 }
 0x562   :  { %2632 = vmatprep.subr.bf16.mxu1 %v2894_v0 }
 0x565   :  { %2633 = vmatpush3.bf16.msra.mxu1 %v2770_v30 }
 0x566   :  { %2634 = vmatprep.subr.bf16.mxu1 %v2894_v0 }
 0x569   :  { %2635 = vmatpush3.bf16.msra.mxu1 %v2771_v31 }
 0x56a   :  { %2640 = vmatprep.subr.bf16.mxu1 %v2894_v0 }
 0x56c   :  { %2637 = vmatmul.mubr.msk.bf16.vlgmr.msra.gmra.mrb[24].mxu1 %vm110_vm1, %v1696_v13 }
 0x56d   :  { %2641 = vmatpush3.bf16.msra.mxu1 %v2772_v1  ;;  %2648 = vmatprep.mubr.msk.bf16.mxu1 %vm2895_vm0, %v2894_v0 }
 0x56e   :  { %2642 = vmatprep.subr.bf16.mxu1 %v2894_v0 }
 0x571   :  { %2643 = vmatpush3.bf16.msra.mxu1 %v2773_v46 }
 0x572   :  { %2644 = vmatprep.subr.bf16.mxu1 %v2894_v0 }
 0x575   :  { %2645 = vmatpush3.bf16.msra.mxu1 %v2774_v16 }
 0x576   :  { %2646 = vmatprep.subr.bf16.mxu1 %v2894_v0 }
 0x579   :  { %2647 = vmatpush3.bf16.msra.mxu1 %v2775_v50 }
 0x57c   :  { %2649 = vmatmul.mubr.msk.bf16.vlgmr.msra.gmra.mrb[28].mxu1 %vm110_vm1, %v2868_v25 }
 0x61f   :  { %v1947_v53 = vpop.f32.mrb[16].mxu1  ;;  %v1988_v55 = vpop.f32.mrb[20].mxu0 }
 0x620   :  { %v1949_v58 = vpop.f32.mrb[17].mxu1  ;;  %v2626_v60 = vpop.f32.mrb[21].mxu0 }
 0x621   :  { %v1951_v47 = vpop.f32.mrb[18].mxu1  ;;  %v1991_v17 = vpop.f32.mrb[22].mxu0 }
 0x622   :  { %v1952_v34 = vpop.f32.mrb[19].mxu1  ;;  %v2627_v2 = vpop.f32.mrb[23].mxu0 }
 0x62f   :  { %v2095_v18 = vpop.f32.mrb[20].mxu1  ;;  %v2256_v36 = vpop.f32.mrb[24].mxu0 }
 0x630   :  { %v2096_v5 = vadd.f32 %v2095_v18, %v1947_v53  ;;  %v2097_v62 = vpop.f32.mrb[21].mxu1  ;;  %v2258_v6 = vpop.f32.mrb[25].mxu0 }
 0x631   :  { %v2098_v0 = vadd.f32 %v2097_v62, %v1949_v58  ;;  %v2099_v8 = vpop.f32.mrb[22].mxu1  ;;  %v2260_v7 = vpop.f32.mrb[26].mxu0 }
 0x632   :  { %v2303_v11 = vadd.f32 %v2256_v36, %v2096_v5  ;;  %v2100_v56 = vpop.f32.mrb[23].mxu1  ;;  %v2261_v52 = vpop.f32.mrb[27].mxu0 }
 0x633   :  { %v2304_v20 = vadd.f32 %v2258_v6, %v2098_v0 }
 0x634   :  { %v2323_v35 = vadd.f32 %v2311_v19, %v2303_v11 }
 0x635   :  { %v2324_v45 = vadd.f32 %v2315_v21, %v2304_v20 }
 0x636   :  { %v2442_v44 = vmul.f32 -1.442695, %v2323_v35 }
 0x638   :  { %2856 = vpow2.f32 %v2442_v44 }
 0x639   :  { %2858 = vtanh.f32 %v2324_v45 }
 0x63f   :  { %v2136_v42 = vpop.f32.mrb[24].mxu1 }
 0x640   :  { %v2137_v14 = vadd.f32 %v2136_v42, %v1988_v55  ;;  %v2638_v10 = vpop.f32.mrb[25].mxu1 }
 0x641   :  { %v2139_v22 = vpop.f32.mrb[26].mxu1 }
 0x642   :  { %v2857_v41 = vpop.eup %2856  ;;  %v2639_v37 = vpop.f32.mrb[27].mxu1 }
 0x643   :  { %v2329_v63 = vadd.f32 1.0, %v2857_v41  ;;  %v2859_v43 = vpop.eup %2858 }
 0x645   :  { %2860 = vrcp.f32 %v2329_v63 }
 0x64f   :  { %v2861_v24 = vpop.eup %2860  ;;  %v2297_v23 = vpop.f32.mrb[28].mxu1 }
 0x650   :  { %v2339_v48 = vmul.f32 %v2861_v24, %v2859_v43  ;;  %v2305_v49 = vadd.f32 %v2297_v23, %v2137_v14  ;;  %v2650_v9 = vpop.f32.mrb[29].mxu1 }
 0x651   :  { %v2300_v57 = vpop.f32.mrb[30].mxu1 }
 0x652   :  { %2343 = vst [vmem:[%s3650_s12] sm:$0xff] %v2339_v48  ;;  %v2325_v38 = vadd.f32 %v2319_v29, %v2305_v49  ;;  %v2651_v26 = vpop.f32.mrb[31].mxu1 }
 0x654   :  { %v2443_v54 = vmul.f32 -1.442695, %v2325_v38 }
 0x656   :  { %2862 = vpow2.f32 %v2443_v54 }
 0x657   :  { %2864 = vtanh.f32 %v2339_v48 }
 0x660   :  { %v2863_v59 = vpop.eup %2862 }
 0x661   :  { %v2336_v61 = vadd.f32 1.0, %v2863_v59  ;;  %v2865_v12 = vpop.eup %2864 }
 0x663   :  { %2866 = vrcp.f32 %v2336_v61 }
 0x66d   :  { %v2867_v51 = vpop.eup %2866 }
 0x66e   :  { %v2341_v39 = vmul.f32 %v2867_v51, %v2865_v12 }
 0x670   :  { %2342 = vst [vmem:[%s3649_s11] sm:$0xff] %v2341_v39  ;;  %v2344_v27 = vpack.c.bf16 %v2341_v39, %v2341_v39 }
 0x672   :  { %2345 = vst [vmem:[%s3651_s13] sm:$0xf] %v2344_v27 }
 0x673   :  { %2358 = vsyncpa [#allocation3], 1 }

</bundles_post_ra>
